<compile_context>
chip_gen: v7x
topology: tpu7x:2x2x1
jax: 0.10.0
libtpu: 0.0.40
codegen_flags: <defaults>
</compile_context>

<pallas_src>
import math

import jax
import jax.numpy as jnp
from jax.experimental import pallas as pl
from jax.experimental.pallas import tpu as pltpu

BN_EPS = 1e-5
VMEM_LIMIT = 32 * 1024 * 1024   # safe on v5e / v6e / v7x; tiles use only a few MiB


# ---------------------------------------------------------------------------
# helpers
# ---------------------------------------------------------------------------
def _round_up(x, m):
    return ((x + m - 1) // m) * m


def _pad_rows(m):
    """Row (M) padding target: multiple of 8 for small M, 128-aligned otherwise."""
    return _round_up(m, 8) if m <= 256 else _round_up(m, 128)


def _pick_row_tile(m):
    for t in (512, 256, 128):
        if m % t == 0:
            return t
    return m if m <= 512 else 8       # m is a multiple of 8 by construction


def _pick_128_tile(d):
    for t in (512, 256, 128):
        if d % t == 0:
            return t
    raise ValueError(f"dimension {d} must be a multiple of 128")


# ---------------------------------------------------------------------------
# Pass A: tiled matmul + per-column batch statistics
#   grid = (C/tn, M/tm, K/tk); outputs: Y (M,C) f32, col_sum (1,C), col_sumsq (1,C)
# ---------------------------------------------------------------------------
def _matmul_stats_kernel(x_ref, w_ref, y_ref, sum_ref, sq_ref, acc_ref):
    m_i = pl.program_id(1)
    k_i = pl.program_id(2)

    @pl.when((m_i == 0) & (k_i == 0))
    def _():
        sum_ref[...] = jnp.zeros_like(sum_ref)
        sq_ref[...] = jnp.zeros_like(sq_ref)

    @pl.when(k_i == 0)
    def _():
        acc_ref[...] = jnp.zeros_like(acc_ref)

    acc_ref[...] += jnp.dot(x_ref[...], w_ref[...],
                            preferred_element_type=jnp.float32)

    @pl.when(k_i == pl.num_programs(2) - 1)
    def _():
        y = acc_ref[...]
        y_ref[...] = y
        sum_ref[...] += jnp.sum(y, axis=0, keepdims=True)
        sq_ref[...] += jnp.sum(y * y, axis=0, keepdims=True)


# ---------------------------------------------------------------------------
# Pass B: tiled elementwise  relu(y * scale + shift)
# ---------------------------------------------------------------------------
def _scale_shift_relu_kernel(y_ref, scale_ref, shift_ref, o_ref):
    o_ref[...] = jnp.maximum(
        y_ref[...] * scale_ref[...] + shift_ref[...], 0.0).astype(o_ref.dtype)


def matmul_bn_relu(x, w, gamma, beta, *, m_true, out_dtype=jnp.float32):
    """relu(BatchNorm_train(x @ w) * gamma + beta).

    x: (M, K)  M % 8 == 0, K % 128 == 0; rows >= m_true must be zero.
    w: (K, C)  C % 128 == 0.   gamma/beta: (1, C) f32.
    BN statistics are computed per column over the first m_true rows
    (zero padding rows contribute nothing to sum / sum-of-squares).
    """
    M, K = x.shape
    K2, C = w.shape
    assert K == K2 and M % 8 == 0 and K % 128 == 0 and C % 128 == 0
    x = x.astype(jnp.bfloat16)
    w = w.astype(jnp.bfloat16)

    tm = _pick_row_tile(M)
    tk = _pick_128_tile(K)
    tn = _pick_128_tile(C)

    y, col_sum, col_sq = pl.pallas_call(
        _matmul_stats_kernel,
        out_shape=(jax.ShapeDtypeStruct((M, C), jnp.float32),
                   jax.ShapeDtypeStruct((1, C), jnp.float32),
                   jax.ShapeDtypeStruct((1, C), jnp.float32)),
        grid_spec=pltpu.PrefetchScalarGridSpec(
            num_scalar_prefetch=0,
            grid=(C // tn, M // tm, K // tk),
            in_specs=[pl.BlockSpec((tm, tk), lambda n, m, k: (m, k)),
                      pl.BlockSpec((tk, tn), lambda n, m, k: (k, n))],
            out_specs=[pl.BlockSpec((tm, tn), lambda n, m, k: (m, n)),
                       pl.BlockSpec((1, tn), lambda n, m, k: (0, n)),
                       pl.BlockSpec((1, tn), lambda n, m, k: (0, n))],
            scratch_shapes=[pltpu.VMEM((tm, tn), jnp.float32)]),
        compiler_params=pltpu.CompilerParams(
            dimension_semantics=("parallel", "arbitrary", "arbitrary"),
            vmem_limit_bytes=VMEM_LIMIT),
        cost_estimate=pl.CostEstimate(
            flops=2 * M * K * C, transcendentals=0,
            bytes_accessed=M * K * 2 + K * C * 2 + M * C * 4 + 2 * C * 4),
    )(x, w)

    # Tiny (1, C) epilogue math in plain JAX: fold BN into a scale/shift pair.
    inv_m = 1.0 / float(m_true)
    mean = col_sum * inv_m
    var = jnp.maximum(col_sq * inv_m - mean * mean, 0.0)     # biased var (train mode)
    scale = gamma * jax.lax.rsqrt(var + BN_EPS)
    shift = beta - mean * scale

    out = pl.pallas_call(
        _scale_shift_relu_kernel,
        out_shape=jax.ShapeDtypeStruct((M, C), out_dtype),
        grid_spec=pltpu.PrefetchScalarGridSpec(
            num_scalar_prefetch=0,
            grid=(M // tm, C // tn),
            in_specs=[pl.BlockSpec((tm, tn), lambda i, j: (i, j)),
                      pl.BlockSpec((1, tn), lambda i, j: (0, j)),
                      pl.BlockSpec((1, tn), lambda i, j: (0, j))],
            out_specs=pl.BlockSpec((tm, tn), lambda i, j: (i, j))),
        compiler_params=pltpu.CompilerParams(
            dimension_semantics=("parallel", "parallel"),
            vmem_limit_bytes=VMEM_LIMIT),
        cost_estimate=pl.CostEstimate(
            flops=2 * M * C, transcendentals=0,
            bytes_accessed=M * C * 4 + 2 * C * 4
            + M * C * jnp.dtype(out_dtype).itemsize),
    )(y, scale, shift)
    return out


# ---------------------------------------------------------------------------
# Plain-JAX glue: im2col for NHWC input (patch column order = kh, kw, Cin).
# TODO(synk): lower the conv as a sum over the k*k taps with strided windows
#             inside the pipelined kernel to avoid the k*k x im2col HBM blowup
#             (matters most on bandwidth-limited v5e).
# ---------------------------------------------------------------------------
def im2col_nhwc(x, k, s, p):
    x = x.astype(jnp.bfloat16)          # bf16 patches: halve im2col HBM traffic
    N, H, W, C = x.shape
    if p:
        x = jnp.pad(x, ((0, 0), (p, p), (p, p), (0, 0)))
    Ho = (H + 2 * p - k) // s + 1
    Wo = (W + 2 * p - k) // s + 1
    cols = []
    for i in range(k):
        for j in range(k):
            cols.append(x[:, i:i + s * (Ho - 1) + 1:s, j:j + s * (Wo - 1) + 1:s, :])
    patches = jnp.stack(cols, axis=3)                 # (N, Ho, Wo, k*k, C)
    return patches.reshape(N * Ho * Wo, k * k * C), Ho, Wo


# ---------------------------------------------------------------------------
# Raw parameters mirroring Encoder.__init__ (PyTorch layout)
# ---------------------------------------------------------------------------
def make_encoder_params(key, image_size, n_chan, n_hidden, n_z):
    assert image_size % 16 == 0, "Image size should be a multiple of 16"
    conv_cfgs = [dict(cin=n_chan, cout=n_hidden, k=4, s=2, p=1)]
    cur_size = image_size // 2
    h = n_hidden
    while cur_size > 8:
        conv_cfgs.append(dict(cin=h, cout=2 * h, k=4, s=2, p=1))
        cur_size //= 2
        h *= 2
    conv_cfgs.append(dict(cin=h, cout=2 * h, k=4, s=1, p=0))
    cur_size = cur_size - 3                            # k=4, s=1, p=0
    fc_in = conv_cfgs[-1]["cout"] * cur_size * cur_size

    params = {"convs": [], "means": {}, "covs": {}}
    for cfg in conv_cfgs:
        key, wk = jax.random.split(key)
        k, cin, cout = cfg["k"], cfg["cin"], cfg["cout"]
        W4 = 0.02 * jax.random.normal(wk, (k, k, cin, cout), jnp.float32)
        params["convs"].append(dict(
            **cfg,
            W=W4.reshape(k * k * cin, cout),            # rows ordered (kh, kw, cin)
            gamma=jnp.ones((cout,), jnp.float32),
            beta=jnp.zeros((cout,), jnp.float32),
        ))
    for name in ("means", "covs"):
        key, wk, bk = jax.random.split(key, 3)
        params[name] = dict(
            W=0.02 * jax.random.normal(wk, (fc_in, n_z), jnp.float32),
            b=0.02 * jax.random.normal(bk, (n_z,), jnp.float32),
            gamma=jnp.ones((n_z,), jnp.float32),
            beta=jnp.zeros((n_z,), jnp.float32),
        )
    return params


# ---------------------------------------------------------------------------
# One-time host-side weight preparation for the Pallas path:
#   * pad Cin/Cout to 128 lanes (padded channels carried through the stack)
#   * cast matmul weights to bf16
#   * fuse the two FC heads along columns, permute rows to NHWC flatten order,
#     lane-pad the fused output width to 128
#   * drop biases (exactly cancelled by train-mode BatchNorm)
# ---------------------------------------------------------------------------
def prepare_pallas_params(params, image_size, n_chan, n_z):
    prep = {"convs": []}
    k0 = params["convs"][0]["k"]
    cin_pad = _round_up(n_chan, 128 // math.gcd(k0 * k0, 128))
    prep["cin_pad_in"] = cin_pad

    size = image_size
    for cp in params["convs"]:
        k, s, p, cin, cout = cp["k"], cp["s"], cp["p"], cp["cin"], cp["cout"]
        cout_pad = _round_up(cout, 128)
        W4 = cp["W"].reshape(k, k, cin, cout)
        W4 = jnp.pad(W4, ((0, 0), (0, 0), (0, cin_pad - cin), (0, cout_pad - cout)))
        prep["convs"].append(dict(
            k=k, s=s, p=p, cout=cout, cout_pad=cout_pad,
            W=W4.reshape(k * k * cin_pad, cout_pad).astype(jnp.bfloat16),
            gamma=jnp.pad(cp["gamma"], (0, cout_pad - cout)).reshape(1, cout_pad),
            beta=jnp.pad(cp["beta"], (0, cout_pad - cout)).reshape(1, cout_pad),
        ))
        size = (size + 2 * p - k) // s + 1
        cin_pad = cout_pad

    # Fused FC heads: columns = [means | covs], rows permuted to NHWC(padded C).
    Hf = Wf = size
    c_true = params["convs"][-1]["cout"]
    c_pad = prep["convs"][-1]["cout_pad"]
    W_cat = jnp.concatenate([params["means"]["W"], params["covs"]["W"]], axis=1)
    hh, ww, cc = jnp.meshgrid(jnp.arange(Hf), jnp.arange(Wf), jnp.arange(c_true),
                              indexing="ij")
    dst = ((hh * Wf + ww) * c_pad + cc).reshape(-1)     # NHWC (padded) flatten index
    src = ((cc * Hf + hh) * Wf + ww).reshape(-1)        # PyTorch NCHW flatten index
    W_full = jnp.zeros((Hf * Wf * c_pad, 2 * n_z), jnp.float32).at[dst].set(W_cat[src])

    n_out = 2 * n_z
    n_out_pad = _round_up(n_out, 128)
    gamma_cat = jnp.concatenate([params["means"]["gamma"], params["covs"]["gamma"]])
    beta_cat = jnp.concatenate([params["means"]["beta"], params["covs"]["beta"]])
    prep["fc"] = dict(
        n_z=n_z,
        W=jnp.pad(W_full, ((0, 0), (0, n_out_pad - n_out))).astype(jnp.bfloat16),
        gamma=jnp.pad(gamma_cat, (0, n_out_pad - n_out)).reshape(1, n_out_pad),
        beta=jnp.pad(beta_cat, (0, n_out_pad - n_out)).reshape(1, n_out_pad),
    )
    return prep


# ---------------------------------------------------------------------------
# Encoder forward (Pallas path)
# ---------------------------------------------------------------------------
def encoder_forward(x_nchw, prep):
    N = x_nchw.shape[0]
    x = jnp.transpose(x_nchw, (0, 2, 3, 1))                      # NCHW -> NHWC (once)
    x = jnp.pad(x, ((0, 0), (0, 0), (0, 0), (0, prep["cin_pad_in"] - x.shape[3])))

    for cp in prep["convs"]:
        patches, Ho, Wo = im2col_nhwc(x, cp["k"], cp["s"], cp["p"])
        M = patches.shape[0]
        Mp = _pad_rows(M)
        patches = jnp.pad(patches, ((0, Mp - M), (0, 0)))
        y = matmul_bn_relu(patches, cp["W"], cp["gamma"], cp["beta"],
                           m_true=M, out_dtype=jnp.bfloat16)
        x = y[:M].reshape(N, Ho, Wo, cp["cout_pad"])

    # NHWC flatten — no transpose; FC weight rows were permuted at prep time.
    flat = x.reshape(N, -1)
    Mp = _pad_rows(N)
    flat = jnp.pad(flat, ((0, Mp - N), (0, 0)))
    fc = prep["fc"]
    y = matmul_bn_relu(flat, fc["W"], fc["gamma"], fc["beta"],
                       m_true=N, out_dtype=jnp.float32)
    n_z = fc["n_z"]
    return [y[:N, :n_z], y[:N, n_z:2 * n_z]]


# ---------------------------------------------------------------------------
# Pure-JAX reference (PyTorch-equivalent math).  matmul_dtype=jnp.bfloat16
# matches the kernel's MXU precision; jnp.float32 gives the exact f32 path.
# ---------------------------------------------------------------------------
def reference_forward(x_nchw, params, matmul_dtype=jnp.float32):
    x = x_nchw
    for cp in params["convs"]:
        w = cp["W"].reshape(cp["k"], cp["k"], cp["cin"], cp["cout"])
        w = jnp.transpose(w, (3, 2, 0, 1))             # -> OIHW
        y = jax.lax.conv_general_dilated(
            x.astype(matmul_dtype), w.astype(matmul_dtype),
            (cp["s"], cp["s"]), [(cp["p"], cp["p"])] * 2,
            dimension_numbers=("NCHW", "OIHW", "NCHW"),
            preferred_element_type=jnp.float32)
        mean = jnp.mean(y, axis=(0, 2, 3), keepdims=True)
        var = jnp.mean(jnp.square(y - mean), axis=(0, 2, 3), keepdims=True)
        y = (y - mean) * jax.lax.rsqrt(var + BN_EPS)
        y = y * cp["gamma"].reshape(1, -1, 1, 1) + cp["beta"].reshape(1, -1, 1, 1)
        x = jnp.maximum(y, 0.0)
    flat = x.reshape(x.shape[0], -1)

    def head(hp):
        y = jnp.dot(flat.astype(matmul_dtype), hp["W"].astype(matmul_dtype),
                    preferred_element_type=jnp.float32) + hp["b"]
        mean = jnp.mean(y, axis=0, keepdims=True)
        var = jnp.mean(jnp.square(y - mean), axis=0, keepdims=True)
        y = (y - mean) * jax.lax.rsqrt(var + BN_EPS) * hp["gamma"] + hp["beta"]
        return jnp.maximum(y, 0.0)

    return [head(params["means"]), head(params["covs"])]


if __name__ == "__main__":
    # small but forward-consistent shapes: image_size=16, n_chan=4, n_hidden=8, n_z=16
    image_size, n_chan, n_hidden, n_z = 16, 4, 8, 16
    batch = 2

    key = jax.random.PRNGKey(0)
    key, pkey, xkey = jax.random.split(key, 3)
    params = make_encoder_params(pkey, image_size, n_chan, n_hidden, n_z)
    prep = prepare_pallas_params(params, image_size, n_chan, n_z)
    x = jax.random.normal(xkey, (batch, n_chan, image_size, image_size), jnp.float32)

    fwd = jax.jit(lambda xx: encoder_forward(xx, prep))
    out_m, out_c = fwd(x)
    jax.block_until_ready(out_m)
    jax.block_until_ready(out_c)

    # precision-matched reference (bf16 matmuls, f32 accumulation + BN epilogue)
    ref_m, ref_c = reference_forward(x, params, matmul_dtype=jnp.bfloat16)
    assert out_m.shape == (batch, n_z) and out_c.shape == (batch, n_z)
    assert jnp.allclose(out_m, ref_m, rtol=3e-2, atol=3e-2), \
        float(jnp.max(jnp.abs(out_m - ref_m)))
    assert jnp.allclose(out_c, ref_c, rtol=3e-2, atol=3e-2), \
        float(jnp.max(jnp.abs(out_c - ref_c)))

    print("KERNEL_OK")
</pallas_src>

<mosaic_0001>
module attributes {stable_mosaic.version = 11 : i64} {
  func.func @_matmul_stats_kernel(%arg0: i32, %arg1: i32, %arg2: i32, %arg3: memref<128x128xbf16, #tpu.memory_space<vmem>>, %arg4: memref<128x128xbf16, #tpu.memory_space<vmem>>, %arg5: memref<128x128xf32, #tpu.memory_space<vmem>>, %arg6: memref<1x128xf32, #tpu.memory_space<vmem>>, %arg7: memref<1x128xf32, #tpu.memory_space<vmem>>, %arg8: memref<128x128xf32, #tpu.memory_space<vmem>>) attributes {dimension_semantics = [#tpu.dimension_semantics<parallel>, #tpu.dimension_semantics<arbitrary>, #tpu.dimension_semantics<arbitrary>], iteration_bounds = array<i64: 1, 1, 1>, scalar_prefetch = 0 : i64, scratch_operands = 1 : i64, tpu.core_type = #tpu.core_type<tc>, window_params = [{transform_indices = @transform_0, window_bounds = array<i64: 128, 128>}, {transform_indices = @transform_1, window_bounds = array<i64: 128, 128>}, {transform_indices = @transform_2, window_bounds = array<i64: 128, 128>}, {transform_indices = @transform_3, window_bounds = array<i64: 1, 128>}, {transform_indices = @transform_4, window_bounds = array<i64: 1, 128>}]} {
    %c0_i32 = arith.constant 0 : i32
    %0 = arith.cmpi eq, %arg1, %c0_i32 : i32
    %c0_i32_0 = arith.constant 0 : i32
    %1 = arith.cmpi eq, %arg2, %c0_i32_0 : i32
    %2 = arith.andi %0, %1 : i1
    %3 = arith.extui %2 : i1 to i32
    %c0_i32_1 = arith.constant 0 : i32
    %4 = arith.cmpi ne, %3, %c0_i32_1 : i32
    scf.if %4 {
      %cst_13 = arith.constant 0.000000e+00 : f32
      %17 = vector.broadcast %cst_13 : f32 to vector<1x128xf32>
      %c0_14 = arith.constant 0 : index
      %c0_15 = arith.constant 0 : index
      %18 = vector.load %arg6[%c0_14, %c0_15] : memref<1x128xf32, #tpu.memory_space<vmem>>, vector<1x128xf32>
      tpu.vector_store %arg6[%c0_14, %c0_15], %17 {strides = array<i32>} : memref<1x128xf32, #tpu.memory_space<vmem>>, vector<1x128xf32>,
      %cst_16 = arith.constant 0.000000e+00 : f32
      %19 = vector.broadcast %cst_16 : f32 to vector<1x128xf32>
      %c0_17 = arith.constant 0 : index
      %c0_18 = arith.constant 0 : index
      %20 = vector.load %arg7[%c0_17, %c0_18] : memref<1x128xf32, #tpu.memory_space<vmem>>, vector<1x128xf32>
      tpu.vector_store %arg7[%c0_17, %c0_18], %19 {strides = array<i32>} : memref<1x128xf32, #tpu.memory_space<vmem>>, vector<1x128xf32>,
    } else {
    }
    %c0_i32_2 = arith.constant 0 : i32
    %5 = arith.cmpi eq, %arg2, %c0_i32_2 : i32
    %6 = arith.extui %5 : i1 to i32
    %c0_i32_3 = arith.constant 0 : i32
    %7 = arith.cmpi ne, %6, %c0_i32_3 : i32
    scf.if %7 {
      %cst_13 = arith.constant 0.000000e+00 : f32
      %17 = vector.broadcast %cst_13 : f32 to vector<128x128xf32>
      %c0_14 = arith.constant 0 : index
      %c0_15 = arith.constant 0 : index
      %18 = vector.load %arg8[%c0_14, %c0_15] : memref<128x128xf32, #tpu.memory_space<vmem>>, vector<128x128xf32>
      tpu.vector_store %arg8[%c0_14, %c0_15], %17 {strides = array<i32>} : memref<128x128xf32, #tpu.memory_space<vmem>>, vector<128x128xf32>,
    } else {
    }
    %c0 = arith.constant 0 : index
    %c0_4 = arith.constant 0 : index
    %8 = vector.load %arg8[%c0, %c0_4] : memref<128x128xf32, #tpu.memory_space<vmem>>, vector<128x128xf32>
    %c0_5 = arith.constant 0 : index
    %c0_6 = arith.constant 0 : index
    %9 = vector.load %arg3[%c0_5, %c0_6] : memref<128x128xbf16, #tpu.memory_space<vmem>>, vector<128x128xbf16>
    %c0_7 = arith.constant 0 : index
    %c0_8 = arith.constant 0 : index
    %10 = vector.load %arg4[%c0_7, %c0_8] : memref<128x128xbf16, #tpu.memory_space<vmem>>, vector<128x128xbf16>
    %cst = arith.constant dense<0.000000e+00> : vector<128x128xf32>
    %11 = tpu.matmul %9, %10, %cst {dimension_numbers = #tpu.dot_dimension_numbers<[1], [0], [0], [1], [0, 0, 1, 1], [], []>} : vector<128x128xbf16>, vector<128x128xbf16>, vector<128x128xf32> -> vector<128x128xf32>
    %12 = arith.addf %8, %11 : vector<128x128xf32>
    %c0_9 = arith.constant 0 : index
    %c0_10 = arith.constant 0 : index
    %13 = vector.load %arg8[%c0_9, %c0_10] : memref<128x128xf32, #tpu.memory_space<vmem>>, vector<128x128xf32>
    tpu.vector_store %arg8[%c0_9, %c0_10], %12 {strides = array<i32>} : memref<128x128xf32, #tpu.memory_space<vmem>>, vector<128x128xf32>,
    %c0_i32_11 = arith.constant 0 : i32
    %14 = arith.cmpi eq, %arg2, %c0_i32_11 : i32
    %15 = arith.extui %14 : i1 to i32
    %c0_i32_12 = arith.constant 0 : i32
    %16 = arith.cmpi ne, %15, %c0_i32_12 : i32
    scf.if %16 {
      %c0_13 = arith.constant 0 : index
      %c0_14 = arith.constant 0 : index
      %17 = vector.load %arg8[%c0_13, %c0_14] : memref<128x128xf32, #tpu.memory_space<vmem>>, vector<128x128xf32>
      %c0_15 = arith.constant 0 : index
      %c0_16 = arith.constant 0 : index
      %18 = vector.load %arg5[%c0_15, %c0_16] : memref<128x128xf32, #tpu.memory_space<vmem>>, vector<128x128xf32>
      tpu.vector_store %arg5[%c0_15, %c0_16], %17 {strides = array<i32>} : memref<128x128xf32, #tpu.memory_space<vmem>>, vector<128x128xf32>,
      %c0_17 = arith.constant 0 : index
      %c0_18 = arith.constant 0 : index
      %19 = vector.load %arg6[%c0_17, %c0_18] : memref<1x128xf32, #tpu.memory_space<vmem>>, vector<1x128xf32>
      %cst_19 = arith.constant dense<0.000000e+00> : vector<128xf32>
      %20 = vector.multi_reduction <add>, %17, %cst_19 [0] : vector<128x128xf32> to vector<128xf32>
      %21 = vector.shape_cast %20 : vector<128xf32> to vector<1x128xf32>
      %22 = arith.addf %19, %21 : vector<1x128xf32>
      %c0_20 = arith.constant 0 : index
      %c0_21 = arith.constant 0 : index
      %23 = vector.load %arg6[%c0_20, %c0_21] : memref<1x128xf32, #tpu.memory_space<vmem>>, vector<1x128xf32>
      tpu.vector_store %arg6[%c0_20, %c0_21], %22 {strides = array<i32>} : memref<1x128xf32, #tpu.memory_space<vmem>>, vector<1x128xf32>,
      %c0_22 = arith.constant 0 : index
      %c0_23 = arith.constant 0 : index
      %24 = vector.load %arg7[%c0_22, %c0_23] : memref<1x128xf32, #tpu.memory_space<vmem>>, vector<1x128xf32>
      %25 = arith.mulf %17, %17 : vector<128x128xf32>
      %cst_24 = arith.constant dense<0.000000e+00> : vector<128xf32>
      %26 = vector.multi_reduction <add>, %25, %cst_24 [0] : vector<128x128xf32> to vector<128xf32>
      %27 = vector.shape_cast %26 : vector<128xf32> to vector<1x128xf32>
      %28 = arith.addf %24, %27 : vector<1x128xf32>
      %c0_25 = arith.constant 0 : index
      %c0_26 = arith.constant 0 : index
      %29 = vector.load %arg7[%c0_25, %c0_26] : memref<1x128xf32, #tpu.memory_space<vmem>>, vector<1x128xf32>
      tpu.vector_store %arg7[%c0_25, %c0_26], %28 {strides = array<i32>} : memref<1x128xf32, #tpu.memory_space<vmem>>, vector<1x128xf32>,
    } else {
    }
    return
  }
  func.func @transform_0(%arg0: i32, %arg1: i32, %arg2: i32) -> (i32, i32) {
    %c0_i32 = arith.constant 0 : i32
    return %arg1, %arg2 : i32, i32
  }
  func.func @transform_1(%arg0: i32, %arg1: i32, %arg2: i32) -> (i32, i32) {
    %c0_i32 = arith.constant 0 : i32
    return %arg2, %arg0 : i32, i32
  }
  func.func @transform_2(%arg0: i32, %arg1: i32, %arg2: i32) -> (i32, i32) {
    %c0_i32 = arith.constant 0 : i32
    return %arg1, %arg0 : i32, i32
  }
  func.func @transform_3(%arg0: i32, %arg1: i32, %arg2: i32) -> (i32, i32) {
    %c0_i32 = arith.constant 0 : i32
    %c0_i32_0 = arith.constant 0 : i32
    return %c0_i32, %arg0 : i32, i32
  }
  func.func @transform_4(%arg0: i32, %arg1: i32, %arg2: i32) -> (i32, i32) {
    %c0_i32 = arith.constant 0 : i32
    %c0_i32_0 = arith.constant 0 : i32
    return %c0_i32, %arg0 : i32, i32
  }
}

module attributes {stable_mosaic.version = 11 : i64} {
  func.func @_scale_shift_relu_kernel(%arg0: i32, %arg1: i32, %arg2: memref<128x128xf32, #tpu.memory_space<vmem>>, %arg3: memref<1x128xf32, #tpu.memory_space<vmem>>, %arg4: memref<1x128xf32, #tpu.memory_space<vmem>>, %arg5: memref<128x128xbf16, #tpu.memory_space<vmem>>) attributes {dimension_semantics = [#tpu.dimension_semantics<parallel>, #tpu.dimension_semantics<parallel>], iteration_bounds = array<i64: 1, 1>, scalar_prefetch = 0 : i64, scratch_operands = 0 : i64, tpu.core_type = #tpu.core_type<tc>, window_params = [{transform_indices = @transform_0, window_bounds = array<i64: 128, 128>}, {transform_indices = @transform_1, window_bounds = array<i64: 1, 128>}, {transform_indices = @transform_2, window_bounds = array<i64: 1, 128>}, {transform_indices = @transform_3, window_bounds = array<i64: 128, 128>}]} {
    %c0 = arith.constant 0 : index
    %c0_0 = arith.constant 0 : index
    %0 = vector.load %arg2[%c0, %c0_0] : memref<128x128xf32, #tpu.memory_space<vmem>>, vector<128x128xf32>
    %c0_1 = arith.constant 0 : index
    %c0_2 = arith.constant 0 : index
    %1 = vector.load %arg3[%c0_1, %c0_2] : memref<1x128xf32, #tpu.memory_space<vmem>>, vector<1x128xf32>
    %2 = vector.broadcast %1 : vector<1x128xf32> to vector<128x128xf32>
    %3 = arith.mulf %0, %2 : vector<128x128xf32>
    %c0_3 = arith.constant 0 : index
    %c0_4 = arith.constant 0 : index
    %4 = vector.load %arg4[%c0_3, %c0_4] : memref<1x128xf32, #tpu.memory_space<vmem>>, vector<1x128xf32>
    %5 = vector.broadcast %4 : vector<1x128xf32> to vector<128x128xf32>
    %6 = arith.addf %3, %5 : vector<128x128xf32>
    %cst = arith.constant 0.000000e+00 : f32
    %7 = vector.broadcast %cst : f32 to vector<128x128xf32>
    %8 = arith.maximumf %6, %7 : vector<128x128xf32>
    %9 = arith.truncf %8 : vector<128x128xf32> to vector<128x128xbf16>
    %c0_5 = arith.constant 0 : index
    %c0_6 = arith.constant 0 : index
    %10 = vector.load %arg5[%c0_5, %c0_6] : memref<128x128xbf16, #tpu.memory_space<vmem>>, vector<128x128xbf16>
    tpu.vector_store %arg5[%c0_5, %c0_6], %9 {strides = array<i32>} : memref<128x128xbf16, #tpu.memory_space<vmem>>, vector<128x128xbf16>,
    return
  }
  func.func @transform_0(%arg0: i32, %arg1: i32) -> (i32, i32) {
    %c0_i32 = arith.constant 0 : i32
    return %arg0, %arg1 : i32, i32
  }
  func.func @transform_1(%arg0: i32, %arg1: i32) -> (i32, i32) {
    %c0_i32 = arith.constant 0 : i32
    %c0_i32_0 = arith.constant 0 : i32
    return %c0_i32, %arg1 : i32, i32
  }
  func.func @transform_2(%arg0: i32, %arg1: i32) -> (i32, i32) {
    %c0_i32 = arith.constant 0 : i32
    %c0_i32_0 = arith.constant 0 : i32
    return %c0_i32, %arg1 : i32, i32
  }
  func.func @transform_3(%arg0: i32, %arg1: i32) -> (i32, i32) {
    %c0_i32 = arith.constant 0 : i32
    return %arg0, %arg1 : i32, i32
  }
}

module attributes {stable_mosaic.version = 11 : i64} {
  func.func @_matmul_stats_kernel(%arg0: i32, %arg1: i32, %arg2: i32, %arg3: memref<56x512xbf16, #tpu.memory_space<vmem>>, %arg4: memref<512x128xbf16, #tpu.memory_space<vmem>>, %arg5: memref<56x128xf32, #tpu.memory_space<vmem>>, %arg6: memref<1x128xf32, #tpu.memory_space<vmem>>, %arg7: memref<1x128xf32, #tpu.memory_space<vmem>>, %arg8: memref<56x128xf32, #tpu.memory_space<vmem>>) attributes {dimension_semantics = [#tpu.dimension_semantics<parallel>, #tpu.dimension_semantics<arbitrary>, #tpu.dimension_semantics<arbitrary>], iteration_bounds = array<i64: 1, 1, 4>, scalar_prefetch = 0 : i64, scratch_operands = 1 : i64, tpu.core_type = #tpu.core_type<tc>, window_params = [{transform_indices = @transform_0, window_bounds = array<i64: 56, 512>}, {transform_indices = @transform_1, window_bounds = array<i64: 512, 128>}, {transform_indices = @transform_2, window_bounds = array<i64: 56, 128>}, {transform_indices = @transform_3, window_bounds = array<i64: 1, 128>}, {transform_indices = @transform_4, window_bounds = array<i64: 1, 128>}]} {
    %c0_i32 = arith.constant 0 : i32
    %0 = arith.cmpi eq, %arg1, %c0_i32 : i32
    %c0_i32_0 = arith.constant 0 : i32
    %1 = arith.cmpi eq, %arg2, %c0_i32_0 : i32
    %2 = arith.andi %0, %1 : i1
    %3 = arith.extui %2 : i1 to i32
    %c0_i32_1 = arith.constant 0 : i32
    %4 = arith.cmpi ne, %3, %c0_i32_1 : i32
    scf.if %4 {
      %cst_12 = arith.constant 0.000000e+00 : f32
      %17 = vector.broadcast %cst_12 : f32 to vector<1x128xf32>
      %c0_13 = arith.constant 0 : index
      %c0_14 = arith.constant 0 : index
      %18 = vector.load %arg6[%c0_13, %c0_14] : memref<1x128xf32, #tpu.memory_space<vmem>>, vector<1x128xf32>
      tpu.vector_store %arg6[%c0_13, %c0_14], %17 {strides = array<i32>} : memref<1x128xf32, #tpu.memory_space<vmem>>, vector<1x128xf32>,
      %cst_15 = arith.constant 0.000000e+00 : f32
      %19 = vector.broadcast %cst_15 : f32 to vector<1x128xf32>
      %c0_16 = arith.constant 0 : index
      %c0_17 = arith.constant 0 : index
      %20 = vector.load %arg7[%c0_16, %c0_17] : memref<1x128xf32, #tpu.memory_space<vmem>>, vector<1x128xf32>
      tpu.vector_store %arg7[%c0_16, %c0_17], %19 {strides = array<i32>} : memref<1x128xf32, #tpu.memory_space<vmem>>, vector<1x128xf32>,
    } else {
    }
    %c0_i32_2 = arith.constant 0 : i32
    %5 = arith.cmpi eq, %arg2, %c0_i32_2 : i32
    %6 = arith.extui %5 : i1 to i32
    %c0_i32_3 = arith.constant 0 : i32
    %7 = arith.cmpi ne, %6, %c0_i32_3 : i32
    scf.if %7 {
      %cst_12 = arith.constant 0.000000e+00 : f32
      %17 = vector.broadcast %cst_12 : f32 to vector<56x128xf32>
      %c0_13 = arith.constant 0 : index
      %c0_14 = arith.constant 0 : index
      %18 = vector.load %arg8[%c0_13, %c0_14] : memref<56x128xf32, #tpu.memory_space<vmem>>, vector<56x128xf32>
      tpu.vector_store %arg8[%c0_13, %c0_14], %17 {strides = array<i32>} : memref<56x128xf32, #tpu.memory_space<vmem>>, vector<56x128xf32>,
    } else {
    }
    %c0 = arith.constant 0 : index
    %c0_4 = arith.constant 0 : index
    %8 = vector.load %arg8[%c0, %c0_4] : memref<56x128xf32, #tpu.memory_space<vmem>>, vector<56x128xf32>
    %c0_5 = arith.constant 0 : index
    %c0_6 = arith.constant 0 : index
    %9 = vector.load %arg3[%c0_5, %c0_6] : memref<56x512xbf16, #tpu.memory_space<vmem>>, vector<56x512xbf16>
    %c0_7 = arith.constant 0 : index
    %c0_8 = arith.constant 0 : index
    %10 = vector.load %arg4[%c0_7, %c0_8] : memref<512x128xbf16, #tpu.memory_space<vmem>>, vector<512x128xbf16>
    %cst = arith.constant dense<0.000000e+00> : vector<56x128xf32>
    %11 = tpu.matmul %9, %10, %cst {dimension_numbers = #tpu.dot_dimension_numbers<[1], [0], [0], [1], [0, 0, 1, 1], [], []>} : vector<56x512xbf16>, vector<512x128xbf16>, vector<56x128xf32> -> vector<56x128xf32>
    %12 = arith.addf %8, %11 : vector<56x128xf32>
    %c0_9 = arith.constant 0 : index
    %c0_10 = arith.constant 0 : index
    %13 = vector.load %arg8[%c0_9, %c0_10] : memref<56x128xf32, #tpu.memory_space<vmem>>, vector<56x128xf32>
    tpu.vector_store %arg8[%c0_9, %c0_10], %12 {strides = array<i32>} : memref<56x128xf32, #tpu.memory_space<vmem>>, vector<56x128xf32>,
    %c3_i32 = arith.constant 3 : i32
    %14 = arith.cmpi eq, %arg2, %c3_i32 : i32
    %15 = arith.extui %14 : i1 to i32
    %c0_i32_11 = arith.constant 0 : i32
    %16 = arith.cmpi ne, %15, %c0_i32_11 : i32
    scf.if %16 {
      %c0_12 = arith.constant 0 : index
      %c0_13 = arith.constant 0 : index
      %17 = vector.load %arg8[%c0_12, %c0_13] : memref<56x128xf32, #tpu.memory_space<vmem>>, vector<56x128xf32>
      %c0_14 = arith.constant 0 : index
      %c0_15 = arith.constant 0 : index
      %18 = vector.load %arg5[%c0_14, %c0_15] : memref<56x128xf32, #tpu.memory_space<vmem>>, vector<56x128xf32>
      tpu.vector_store %arg5[%c0_14, %c0_15], %17 {strides = array<i32>} : memref<56x128xf32, #tpu.memory_space<vmem>>, vector<56x128xf32>,
      %c0_16 = arith.constant 0 : index
      %c0_17 = arith.constant 0 : index
      %19 = vector.load %arg6[%c0_16, %c0_17] : memref<1x128xf32, #tpu.memory_space<vmem>>, vector<1x128xf32>
      %cst_18 = arith.constant dense<0.000000e+00> : vector<128xf32>
      %20 = vector.multi_reduction <add>, %17, %cst_18 [0] : vector<56x128xf32> to vector<128xf32>
      %21 = vector.shape_cast %20 : vector<128xf32> to vector<1x128xf32>
      %22 = arith.addf %19, %21 : vector<1x128xf32>
      %c0_19 = arith.constant 0 : index
      %c0_20 = arith.constant 0 : index
      %23 = vector.load %arg6[%c0_19, %c0_20] : memref<1x128xf32, #tpu.memory_space<vmem>>, vector<1x128xf32>
      tpu.vector_store %arg6[%c0_19, %c0_20], %22 {strides = array<i32>} : memref<1x128xf32, #tpu.memory_space<vmem>>, vector<1x128xf32>,
      %c0_21 = arith.constant 0 : index
      %c0_22 = arith.constant 0 : index
      %24 = vector.load %arg7[%c0_21, %c0_22] : memref<1x128xf32, #tpu.memory_space<vmem>>, vector<1x128xf32>
      %25 = arith.mulf %17, %17 : vector<56x128xf32>
      %cst_23 = arith.constant dense<0.000000e+00> : vector<128xf32>
      %26 = vector.multi_reduction <add>, %25, %cst_23 [0] : vector<56x128xf32> to vector<128xf32>
      %27 = vector.shape_cast %26 : vector<128xf32> to vector<1x128xf32>
      %28 = arith.addf %24, %27 : vector<1x128xf32>
      %c0_24 = arith.constant 0 : index
      %c0_25 = arith.constant 0 : index
      %29 = vector.load %arg7[%c0_24, %c0_25] : memref<1x128xf32, #tpu.memory_space<vmem>>, vector<1x128xf32>
      tpu.vector_store %arg7[%c0_24, %c0_25], %28 {strides = array<i32>} : memref<1x128xf32, #tpu.memory_space<vmem>>, vector<1x128xf32>,
    } else {
    }
    return
  }
  func.func @transform_0(%arg0: i32, %arg1: i32, %arg2: i32) -> (i32, i32) {
    %c0_i32 = arith.constant 0 : i32
    return %arg1, %arg2 : i32, i32
  }
  func.func @transform_1(%arg0: i32, %arg1: i32, %arg2: i32) -> (i32, i32) {
    %c0_i32 = arith.constant 0 : i32
    return %arg2, %arg0 : i32, i32
  }
  func.func @transform_2(%arg0: i32, %arg1: i32, %arg2: i32) -> (i32, i32) {
    %c0_i32 = arith.constant 0 : i32
    return %arg1, %arg0 : i32, i32
  }
  func.func @transform_3(%arg0: i32, %arg1: i32, %arg2: i32) -> (i32, i32) {
    %c0_i32 = arith.constant 0 : i32
    %c0_i32_0 = arith.constant 0 : i32
    return %c0_i32, %arg0 : i32, i32
  }
  func.func @transform_4(%arg0: i32, %arg1: i32, %arg2: i32) -> (i32, i32) {
    %c0_i32 = arith.constant 0 : i32
    %c0_i32_0 = arith.constant 0 : i32
    return %c0_i32, %arg0 : i32, i32
  }
}

module attributes {stable_mosaic.version = 11 : i64} {
  func.func @_scale_shift_relu_kernel(%arg0: i32, %arg1: i32, %arg2: memref<56x128xf32, #tpu.memory_space<vmem>>, %arg3: memref<1x128xf32, #tpu.memory_space<vmem>>, %arg4: memref<1x128xf32, #tpu.memory_space<vmem>>, %arg5: memref<56x128xbf16, #tpu.memory_space<vmem>>) attributes {dimension_semantics = [#tpu.dimension_semantics<parallel>, #tpu.dimension_semantics<parallel>], iteration_bounds = array<i64: 1, 1>, scalar_prefetch = 0 : i64, scratch_operands = 0 : i64, tpu.core_type = #tpu.core_type<tc>, window_params = [{transform_indices = @transform_0, window_bounds = array<i64: 56, 128>}, {transform_indices = @transform_1, window_bounds = array<i64: 1, 128>}, {transform_indices = @transform_2, window_bounds = array<i64: 1, 128>}, {transform_indices = @transform_3, window_bounds = array<i64: 56, 128>}]} {
    %c0 = arith.constant 0 : index
    %c0_0 = arith.constant 0 : index
    %0 = vector.load %arg2[%c0, %c0_0] : memref<56x128xf32, #tpu.memory_space<vmem>>, vector<56x128xf32>
    %c0_1 = arith.constant 0 : index
    %c0_2 = arith.constant 0 : index
    %1 = vector.load %arg3[%c0_1, %c0_2] : memref<1x128xf32, #tpu.memory_space<vmem>>, vector<1x128xf32>
    %2 = vector.broadcast %1 : vector<1x128xf32> to vector<56x128xf32>
    %3 = arith.mulf %0, %2 : vector<56x128xf32>
    %c0_3 = arith.constant 0 : index
    %c0_4 = arith.constant 0 : index
    %4 = vector.load %arg4[%c0_3, %c0_4] : memref<1x128xf32, #tpu.memory_space<vmem>>, vector<1x128xf32>
    %5 = vector.broadcast %4 : vector<1x128xf32> to vector<56x128xf32>
    %6 = arith.addf %3, %5 : vector<56x128xf32>
    %cst = arith.constant 0.000000e+00 : f32
    %7 = vector.broadcast %cst : f32 to vector<56x128xf32>
    %8 = arith.maximumf %6, %7 : vector<56x128xf32>
    %9 = arith.truncf %8 : vector<56x128xf32> to vector<56x128xbf16>
    %c0_5 = arith.constant 0 : index
    %c0_6 = arith.constant 0 : index
    %10 = vector.load %arg5[%c0_5, %c0_6] : memref<56x128xbf16, #tpu.memory_space<vmem>>, vector<56x128xbf16>
    tpu.vector_store %arg5[%c0_5, %c0_6], %9 {strides = array<i32>} : memref<56x128xbf16, #tpu.memory_space<vmem>>, vector<56x128xbf16>,
    return
  }
  func.func @transform_0(%arg0: i32, %arg1: i32) -> (i32, i32) {
    %c0_i32 = arith.constant 0 : i32
    return %arg0, %arg1 : i32, i32
  }
  func.func @transform_1(%arg0: i32, %arg1: i32) -> (i32, i32) {
    %c0_i32 = arith.constant 0 : i32
    %c0_i32_0 = arith.constant 0 : i32
    return %c0_i32, %arg1 : i32, i32
  }
  func.func @transform_2(%arg0: i32, %arg1: i32) -> (i32, i32) {
    %c0_i32 = arith.constant 0 : i32
    %c0_i32_0 = arith.constant 0 : i32
    return %c0_i32, %arg1 : i32, i32
  }
  func.func @transform_3(%arg0: i32, %arg1: i32) -> (i32, i32) {
    %c0_i32 = arith.constant 0 : i32
    return %arg0, %arg1 : i32, i32
  }
}

module attributes {stable_mosaic.version = 11 : i64} {
  func.func @_matmul_stats_kernel(%arg0: i32, %arg1: i32, %arg2: i32, %arg3: memref<8x128xbf16, #tpu.memory_space<vmem>>, %arg4: memref<128x128xbf16, #tpu.memory_space<vmem>>, %arg5: memref<8x128xf32, #tpu.memory_space<vmem>>, %arg6: memref<1x128xf32, #tpu.memory_space<vmem>>, %arg7: memref<1x128xf32, #tpu.memory_space<vmem>>, %arg8: memref<8x128xf32, #tpu.memory_space<vmem>>) attributes {dimension_semantics = [#tpu.dimension_semantics<parallel>, #tpu.dimension_semantics<arbitrary>, #tpu.dimension_semantics<arbitrary>], iteration_bounds = array<i64: 1, 1, 25>, scalar_prefetch = 0 : i64, scratch_operands = 1 : i64, tpu.core_type = #tpu.core_type<tc>, window_params = [{transform_indices = @transform_0, window_bounds = array<i64: 8, 128>}, {transform_indices = @transform_1, window_bounds = array<i64: 128, 128>}, {transform_indices = @transform_2, window_bounds = array<i64: 8, 128>}, {transform_indices = @transform_3, window_bounds = array<i64: 1, 128>}, {transform_indices = @transform_4, window_bounds = array<i64: 1, 128>}]} {
    %c0_i32 = arith.constant 0 : i32
    %0 = arith.cmpi eq, %arg1, %c0_i32 : i32
    %c0_i32_0 = arith.constant 0 : i32
    %1 = arith.cmpi eq, %arg2, %c0_i32_0 : i32
    %2 = arith.andi %0, %1 : i1
    %3 = arith.extui %2 : i1 to i32
    %c0_i32_1 = arith.constant 0 : i32
    %4 = arith.cmpi ne, %3, %c0_i32_1 : i32
    scf.if %4 {
      %cst_12 = arith.constant 0.000000e+00 : f32
      %17 = vector.broadcast %cst_12 : f32 to vector<1x128xf32>
      %c0_13 = arith.constant 0 : index
      %c0_14 = arith.constant 0 : index
      %18 = vector.load %arg6[%c0_13, %c0_14] : memref<1x128xf32, #tpu.memory_space<vmem>>, vector<1x128xf32>
      tpu.vector_store %arg6[%c0_13, %c0_14], %17 {strides = array<i32>} : memref<1x128xf32, #tpu.memory_space<vmem>>, vector<1x128xf32>,
      %cst_15 = arith.constant 0.000000e+00 : f32
      %19 = vector.broadcast %cst_15 : f32 to vector<1x128xf32>
      %c0_16 = arith.constant 0 : index
      %c0_17 = arith.constant 0 : index
      %20 = vector.load %arg7[%c0_16, %c0_17] : memref<1x128xf32, #tpu.memory_space<vmem>>, vector<1x128xf32>
      tpu.vector_store %arg7[%c0_16, %c0_17], %19 {strides = array<i32>} : memref<1x128xf32, #tpu.memory_space<vmem>>, vector<1x128xf32>,
    } else {
    }
    %c0_i32_2 = arith.constant 0 : i32
    %5 = arith.cmpi eq, %arg2, %c0_i32_2 : i32
    %6 = arith.extui %5 : i1 to i32
    %c0_i32_3 = arith.constant 0 : i32
    %7 = arith.cmpi ne, %6, %c0_i32_3 : i32
    scf.if %7 {
      %cst_12 = arith.constant 0.000000e+00 : f32
      %17 = vector.broadcast %cst_12 : f32 to vector<8x128xf32>
      %c0_13 = arith.constant 0 : index
      %c0_14 = arith.constant 0 : index
      %18 = vector.load %arg8[%c0_13, %c0_14] : memref<8x128xf32, #tpu.memory_space<vmem>>, vector<8x128xf32>
      tpu.vector_store %arg8[%c0_13, %c0_14], %17 {strides = array<i32>} : memref<8x128xf32, #tpu.memory_space<vmem>>, vector<8x128xf32>,
    } else {
    }
    %c0 = arith.constant 0 : index
    %c0_4 = arith.constant 0 : index
    %8 = vector.load %arg8[%c0, %c0_4] : memref<8x128xf32, #tpu.memory_space<vmem>>, vector<8x128xf32>
    %c0_5 = arith.constant 0 : index
    %c0_6 = arith.constant 0 : index
    %9 = vector.load %arg3[%c0_5, %c0_6] : memref<8x128xbf16, #tpu.memory_space<vmem>>, vector<8x128xbf16>
    %c0_7 = arith.constant 0 : index
    %c0_8 = arith.constant 0 : index
    %10 = vector.load %arg4[%c0_7, %c0_8] : memref<128x128xbf16, #tpu.memory_space<vmem>>, vector<128x128xbf16>
    %cst = arith.constant dense<0.000000e+00> : vector<8x128xf32>
    %11 = tpu.matmul %9, %10, %cst {dimension_numbers = #tpu.dot_dimension_numbers<[1], [0], [0], [1], [0, 0, 1, 1], [], []>} : vector<8x128xbf16>, vector<128x128xbf16>, vector<8x128xf32> -> vector<8x128xf32>
    %12 = arith.addf %8, %11 : vector<8x128xf32>
    %c0_9 = arith.constant 0 : index
    %c0_10 = arith.constant 0 : index
    %13 = vector.load %arg8[%c0_9, %c0_10] : memref<8x128xf32, #tpu.memory_space<vmem>>, vector<8x128xf32>
    tpu.vector_store %arg8[%c0_9, %c0_10], %12 {strides = array<i32>} : memref<8x128xf32, #tpu.memory_space<vmem>>, vector<8x128xf32>,
    %c24_i32 = arith.constant 24 : i32
    %14 = arith.cmpi eq, %arg2, %c24_i32 : i32
    %15 = arith.extui %14 : i1 to i32
    %c0_i32_11 = arith.constant 0 : i32
    %16 = arith.cmpi ne, %15, %c0_i32_11 : i32
    scf.if %16 {
      %c0_12 = arith.constant 0 : index
      %c0_13 = arith.constant 0 : index
      %17 = vector.load %arg8[%c0_12, %c0_13] : memref<8x128xf32, #tpu.memory_space<vmem>>, vector<8x128xf32>
      %c0_14 = arith.constant 0 : index
      %c0_15 = arith.constant 0 : index
      %18 = vector.load %arg5[%c0_14, %c0_15] : memref<8x128xf32, #tpu.memory_space<vmem>>, vector<8x128xf32>
      tpu.vector_store %arg5[%c0_14, %c0_15], %17 {strides = array<i32>} : memref<8x128xf32, #tpu.memory_space<vmem>>, vector<8x128xf32>,
      %c0_16 = arith.constant 0 : index
      %c0_17 = arith.constant 0 : index
      %19 = vector.load %arg6[%c0_16, %c0_17] : memref<1x128xf32, #tpu.memory_space<vmem>>, vector<1x128xf32>
      %cst_18 = arith.constant dense<0.000000e+00> : vector<128xf32>
      %20 = vector.multi_reduction <add>, %17, %cst_18 [0] : vector<8x128xf32> to vector<128xf32>
      %21 = vector.shape_cast %20 : vector<128xf32> to vector<1x128xf32>
      %22 = arith.addf %19, %21 : vector<1x128xf32>
      %c0_19 = arith.constant 0 : index
      %c0_20 = arith.constant 0 : index
      %23 = vector.load %arg6[%c0_19, %c0_20] : memref<1x128xf32, #tpu.memory_space<vmem>>, vector<1x128xf32>
      tpu.vector_store %arg6[%c0_19, %c0_20], %22 {strides = array<i32>} : memref<1x128xf32, #tpu.memory_space<vmem>>, vector<1x128xf32>,
      %c0_21 = arith.constant 0 : index
      %c0_22 = arith.constant 0 : index
      %24 = vector.load %arg7[%c0_21, %c0_22] : memref<1x128xf32, #tpu.memory_space<vmem>>, vector<1x128xf32>
      %25 = arith.mulf %17, %17 : vector<8x128xf32>
      %cst_23 = arith.constant dense<0.000000e+00> : vector<128xf32>
      %26 = vector.multi_reduction <add>, %25, %cst_23 [0] : vector<8x128xf32> to vector<128xf32>
      %27 = vector.shape_cast %26 : vector<128xf32> to vector<1x128xf32>
      %28 = arith.addf %24, %27 : vector<1x128xf32>
      %c0_24 = arith.constant 0 : index
      %c0_25 = arith.constant 0 : index
      %29 = vector.load %arg7[%c0_24, %c0_25] : memref<1x128xf32, #tpu.memory_space<vmem>>, vector<1x128xf32>
      tpu.vector_store %arg7[%c0_24, %c0_25], %28 {strides = array<i32>} : memref<1x128xf32, #tpu.memory_space<vmem>>, vector<1x128xf32>,
    } else {
    }
    return
  }
  func.func @transform_0(%arg0: i32, %arg1: i32, %arg2: i32) -> (i32, i32) {
    %c0_i32 = arith.constant 0 : i32
    return %arg1, %arg2 : i32, i32
  }
  func.func @transform_1(%arg0: i32, %arg1: i32, %arg2: i32) -> (i32, i32) {
    %c0_i32 = arith.constant 0 : i32
    return %arg2, %arg0 : i32, i32
  }
  func.func @transform_2(%arg0: i32, %arg1: i32, %arg2: i32) -> (i32, i32) {
    %c0_i32 = arith.constant 0 : i32
    return %arg1, %arg0 : i32, i32
  }
  func.func @transform_3(%arg0: i32, %arg1: i32, %arg2: i32) -> (i32, i32) {
    %c0_i32 = arith.constant 0 : i32
    %c0_i32_0 = arith.constant 0 : i32
    return %c0_i32, %arg0 : i32, i32
  }
  func.func @transform_4(%arg0: i32, %arg1: i32, %arg2: i32) -> (i32, i32) {
    %c0_i32 = arith.constant 0 : i32
    %c0_i32_0 = arith.constant 0 : i32
    return %c0_i32, %arg0 : i32, i32
  }
}

module attributes {stable_mosaic.version = 11 : i64} {
  func.func @_scale_shift_relu_kernel(%arg0: i32, %arg1: i32, %arg2: memref<8x128xf32, #tpu.memory_space<vmem>>, %arg3: memref<1x128xf32, #tpu.memory_space<vmem>>, %arg4: memref<1x128xf32, #tpu.memory_space<vmem>>, %arg5: memref<8x128xf32, #tpu.memory_space<vmem>>) attributes {dimension_semantics = [#tpu.dimension_semantics<parallel>, #tpu.dimension_semantics<parallel>], iteration_bounds = array<i64: 1, 1>, scalar_prefetch = 0 : i64, scratch_operands = 0 : i64, tpu.core_type = #tpu.core_type<tc>, window_params = [{transform_indices = @transform_0, window_bounds = array<i64: 8, 128>}, {transform_indices = @transform_1, window_bounds = array<i64: 1, 128>}, {transform_indices = @transform_2, window_bounds = array<i64: 1, 128>}, {transform_indices = @transform_3, window_bounds = array<i64: 8, 128>}]} {
    %c0 = arith.constant 0 : index
    %c0_0 = arith.constant 0 : index
    %0 = vector.load %arg2[%c0, %c0_0] : memref<8x128xf32, #tpu.memory_space<vmem>>, vector<8x128xf32>
    %c0_1 = arith.constant 0 : index
    %c0_2 = arith.constant 0 : index
    %1 = vector.load %arg3[%c0_1, %c0_2] : memref<1x128xf32, #tpu.memory_space<vmem>>, vector<1x128xf32>
    %2 = vector.broadcast %1 : vector<1x128xf32> to vector<8x128xf32>
    %3 = arith.mulf %0, %2 : vector<8x128xf32>
    %c0_3 = arith.constant 0 : index
    %c0_4 = arith.constant 0 : index
    %4 = vector.load %arg4[%c0_3, %c0_4] : memref<1x128xf32, #tpu.memory_space<vmem>>, vector<1x128xf32>
    %5 = vector.broadcast %4 : vector<1x128xf32> to vector<8x128xf32>
    %6 = arith.addf %3, %5 : vector<8x128xf32>
    %cst = arith.constant 0.000000e+00 : f32
    %7 = vector.broadcast %cst : f32 to vector<8x128xf32>
    %8 = arith.maximumf %6, %7 : vector<8x128xf32>
    %c0_5 = arith.constant 0 : index
    %c0_6 = arith.constant 0 : index
    %9 = vector.load %arg5[%c0_5, %c0_6] : memref<8x128xf32, #tpu.memory_space<vmem>>, vector<8x128xf32>
    tpu.vector_store %arg5[%c0_5, %c0_6], %8 {strides = array<i32>} : memref<8x128xf32, #tpu.memory_space<vmem>>, vector<8x128xf32>,
    return
  }
  func.func @transform_0(%arg0: i32, %arg1: i32) -> (i32, i32) {
    %c0_i32 = arith.constant 0 : i32
    return %arg0, %arg1 : i32, i32
  }
  func.func @transform_1(%arg0: i32, %arg1: i32) -> (i32, i32) {
    %c0_i32 = arith.constant 0 : i32
    %c0_i32_0 = arith.constant 0 : i32
    return %c0_i32, %arg1 : i32, i32
  }
  func.func @transform_2(%arg0: i32, %arg1: i32) -> (i32, i32) {
    %c0_i32 = arith.constant 0 : i32
    %c0_i32_0 = arith.constant 0 : i32
    return %c0_i32, %arg1 : i32, i32
  }
  func.func @transform_3(%arg0: i32, %arg1: i32) -> (i32, i32) {
    %c0_i32 = arith.constant 0 : i32
    return %arg0, %arg1 : i32, i32
  }
}

</mosaic_0001>

<bundles_post_ra>
// kernel: _lambda_.7
= control target key start
LH: loop header
LB: loop body
LE: loop exit
PB: predicated region body
PF: predicated region fallthrough
CT: control target
= control target key end

     0   :  { %s391_s0 = inlined_call_operand.vmem [shape: f32[128,128], index: 0, kind: input, shape index: {}]   ;;  %s392_s1 = inlined_call_operand.vmem [shape: f32[1,128], index: 1, kind: input, shape index: {}]   ;;  %s393_s2 = inlined_call_operand.vmem [shape: f32[1,128], index: 2, kind: input, shape index: {}]   ;;  %s394_s3 = inlined_call_operand.vmem [shape: bf16[128,128], index: 3, kind: output, shape index: {}]  }
   0x1   :  { %v14_v0 = vld [vmem:[%s391_s0] sm:$0xff]  ;;  %v15_v1 = vld [vmem:[%s391_s0 + $0x8] sm:$0xff]  ;;  %v16_v6 = vld [vmem:[%s391_s0 + $0x10] sm:$0xff] }
   0x2   :  { %v286_v2 = vld [vmem:[%s392_s1] ss:$0 sm:$0xff]  ;;  %v17_v7 = vld [vmem:[%s391_s0 + $0x18] sm:$0xff]  ;;  %v19_v11 = vld [vmem:[%s391_s0 + $0x28] sm:$0xff] }
   0x3   :  { %v37_v3 = vmul.f32 %v286_v2, %v14_v0  ;;  %v38_v4 = vmul.f32 %v286_v2, %v15_v1  ;;  %v293_v5 = vld [vmem:[%s393_s2] ss:$0 sm:$0xff]  ;;  %v39_v8 = vmul.f32 %v286_v2, %v16_v6  ;;  %v40_v9 = vmul.f32 %v286_v2, %v17_v7  ;;  %v20_v12 = vld [vmem:[%s391_s0 + $0x30] sm:$0xff]  ;;  %v21_v17 = vld [vmem:[%s391_s0 + $0x38] sm:$0xff] }
   0x4   :  { %v18_v10 = vld [vmem:[%s391_s0 + $0x20] sm:$0xff]  ;;  %v42_v16 = vmul.f32 %v286_v2, %v19_v11  ;;  %v43_v20 = vmul.f32 %v286_v2, %v20_v12  ;;  %v44_v21 = vmul.f32 %v286_v2, %v21_v17  ;;  %v23_v27 = vld [vmem:[%s391_s0 + $0x48] sm:$0xff]  ;;  %v24_v32 = vld [vmem:[%s391_s0 + $0x50] sm:$0xff] }
   0x5   :  { %v60_v13 = vadd.f32 %v293_v5, %v37_v3  ;;  %v61_v14 = vadd.f32 %v293_v5, %v38_v4  ;;  %v41_v15 = vmul.f32 %v286_v2, %v18_v10  ;;  %v62_v18 = vadd.f32 %v293_v5, %v39_v8  ;;  %v22_v22 = vld [vmem:[%s391_s0 + $0x40] sm:$0xff]  ;;  %v25_v33 = vld [vmem:[%s391_s0 + $0x58] sm:$0xff]  ;;  %v27_v39 = vld [vmem:[%s391_s0 + $0x68] sm:$0xff] }
   0x6   :  { %v63_v19 = vadd.f32 %v293_v5, %v40_v9  ;;  %v65_v26 = vadd.f32 %v293_v5, %v42_v16  ;;  %v66_v30 = vadd.f32 %v293_v5, %v43_v20  ;;  %v67_v31 = vadd.f32 %v293_v5, %v44_v21  ;;  %v26_v38 = vld [vmem:[%s391_s0 + $0x60] sm:$0xff]  ;;  %v28_v44 = vld [vmem:[%s391_s0 + $0x70] sm:$0xff]  ;;  %v29_v49 = vld [vmem:[%s391_s0 + $0x78] sm:$0xff] }
   0x7   :  { %v76_v23 = vmax.f32 %v60_v13, 0.0  ;;  %v77_v24 = vmax.f32 %v61_v14, 0.0  ;;  %v64_v25 = vadd.f32 %v293_v5, %v41_v15  ;;  %v78_v28 = vmax.f32 %v62_v18, 0.0 }
   0x8   :  { %v79_v29 = vmax.f32 %v63_v19, 0.0  ;;  %v81_v36 = vmax.f32 %v65_v26, 0.0  ;;  %v45_v37 = vmul.f32 %v286_v2, %v22_v22  ;;  %v82_v41 = vmax.f32 %v66_v30, 0.0 }
   0x9   :  { %v213_v34 = vpack.c.bf16 %v77_v24, %v76_v23  ;;  %v80_v35 = vmax.f32 %v64_v25, 0.0  ;;  %v83_v42 = vmax.f32 %v67_v31, 0.0  ;;  %v46_v43 = vmul.f32 %v286_v2, %v23_v27 }
   0xa   :  { %v218_v40 = vpack.c.bf16 %v79_v29, %v78_v28  ;;  %v68_v46 = vadd.f32 %v293_v5, %v45_v37  ;;  %v47_v47 = vmul.f32 %v286_v2, %v24_v32  ;;  %v48_v48 = vmul.f32 %v286_v2, %v25_v33 }
   0xb   :  { %214 = vst [vmem:[%s394_s3] sm:$0xff] %v213_v34   ;;  %v223_v45 = vpack.c.bf16 %v81_v36, %v80_v35  ;;  %v228_v50 = vpack.c.bf16 %v83_v42, %v82_v41  ;;  %v69_v51 = vadd.f32 %v293_v5, %v46_v43  ;;  %v49_v52 = vmul.f32 %v286_v2, %v26_v38 }
   0xc   :  { %250 = vst [vmem:[%s394_s3 + $0x8] sm:$0xff] %v218_v40   ;;  %v50_v53 = vmul.f32 %v286_v2, %v27_v39  ;;  %v84_v54 = vmax.f32 %v68_v46, 0.0  ;;  %v70_v55 = vadd.f32 %v293_v5, %v47_v47  ;;  %v71_v56 = vadd.f32 %v293_v5, %v48_v48 }
   0xd   :  { %251 = vst [vmem:[%s394_s3 + $0x10] sm:$0xff] %v223_v45   ;;  %v51_v57 = vmul.f32 %v286_v2, %v28_v44  ;;  %252 = vst [vmem:[%s394_s3 + $0x18] sm:$0xff] %v228_v50   ;;  %v85_v58 = vmax.f32 %v69_v51, 0.0  ;;  %v72_v59 = vadd.f32 %v293_v5, %v49_v52  ;;  %v52_v61 = vmul.f32 %v286_v2, %v29_v49 }
   0xe   :  { %v73_v60 = vadd.f32 %v293_v5, %v50_v53  ;;  %v86_v62 = vmax.f32 %v70_v55, 0.0  ;;  %v87_v63 = vmax.f32 %v71_v56, 0.0 }
   0xf   :  { %v74_v0 = vadd.f32 %v293_v5, %v51_v57  ;;  %v233_v1 = vpack.c.bf16 %v85_v58, %v84_v54  ;;  %v88_v3 = vmax.f32 %v72_v59, 0.0  ;;  %v75_v6 = vadd.f32 %v293_v5, %v52_v61 }
  0x10   :  { %v89_v4 = vmax.f32 %v73_v60, 0.0  ;;  %v238_v7 = vpack.c.bf16 %v87_v63, %v86_v62 }
  0x11   :  { %v90_v8 = vmax.f32 %v74_v0, 0.0  ;;  %253 = vst [vmem:[%s394_s3 + $0x20] sm:$0xff] %v233_v1   ;;  %v91_v10 = vmax.f32 %v75_v6, 0.0 }
  0x12   :  { %v243_v9 = vpack.c.bf16 %v89_v4, %v88_v3  ;;  %254 = vst [vmem:[%s394_s3 + $0x28] sm:$0xff] %v238_v7  }
  0x13   :  { %v248_v2 = vpack.c.bf16 %v91_v10, %v90_v8 }
  0x14   :  { %255 = vst [vmem:[%s394_s3 + $0x30] sm:$0xff] %v243_v9  }
  0x15   :  { %256 = vst [vmem:[%s394_s3 + $0x38] sm:$0xff] %v248_v2  }

// kernel: _lambda_.6
= control target key start
LH: loop header
LB: loop body
LE: loop exit
PB: predicated region body
PF: predicated region fallthrough
CT: control target
= control target key end

     0   :  { %v523_v16 = vmov 0.0   ;;  %s663_s1 = inlined_call_operand.vmem [shape: bf16[128,128], index: 1, kind: input, shape index: {}]   ;;  %s664_s0 = inlined_call_operand.vmem [shape: bf16[128,128], index: 0, kind: input, shape index: {}]   ;;  %s665_s3 = inlined_call_operand.vmem [shape: f32[1,128], index: 3, kind: output, shape index: {1}]   ;;  %s666_s4 = inlined_call_operand.vmem [shape: f32[1,128], index: 4, kind: output, shape index: {2}]   ;;  %s667_s2 = inlined_call_operand.vmem [shape: f32[128,128], index: 2, kind: output, shape index: {0}]  }
   0x1   :  { %v507_v0 = vld [vmem:[%s663_s1] sm:$0xff]   ;;  %v508_v1 = vld [vmem:[%s663_s1 + $0x8] sm:$0xff]   ;;  %v509_v2 = vld [vmem:[%s663_s1 + $0x10] sm:$0xff]   ;;  %21 = vst [vmem:[%s665_s3] sm:$0x1] %v523_v16 }
   0x2   :  { %458 = vmatprep.subr.bf16.mxu0 %v507_v0  ;;  %490 = vmatprep.subr.bf16.mxu1 %v507_v0  ;;  %v510_v3 = vld [vmem:[%s663_s1 + $0x18] sm:$0xff]   ;;  %v515_v4 = vld [vmem:[%s664_s0] sm:$0xff]   ;;  %v512_v7 = vld [vmem:[%s663_s1 + $0x28] sm:$0xff]   ;;  %22 = vst [vmem:[%s666_s4] sm:$0x1] %v523_v16 }
   0x3   :  { %459 = vmatpush3.bf16.msra.mxu0 %v507_v0  ;;  %498 = vmatpush3.bf16.msra.mxu1 %v507_v0  ;;  %v511_v5 = vld [vmem:[%s663_s1 + $0x20] sm:$0xff]   ;;  %v513_v8 = vld [vmem:[%s663_s1 + $0x30] sm:$0xff]   ;;  %v514_v9 = vld [vmem:[%s663_s1 + $0x38] sm:$0xff]  }
   0x4   :  { %460 = vmatprep.subr.bf16.mxu0 %v508_v1  ;;  %491 = vmatprep.subr.bf16.mxu1 %v508_v1  ;;  %v519_v6 = vld [vmem:[%s664_s0 + $0x20] sm:$0xff]   ;;  %v516_v10 = vld [vmem:[%s664_s0 + $0x8] sm:$0xff]   ;;  %v517_v12 = vld [vmem:[%s664_s0 + $0x10] sm:$0xff]  }
   0x5   :  { %474 = vmatprep.mubr.bf16.mxu0 %v515_v4  ;;  %482 = vmatprep.mubr.bf16.mxu1 %v519_v6  ;;  %v520_v11 = vld [vmem:[%s664_s0 + $0x28] sm:$0xff]   ;;  %v521_v13 = vld [vmem:[%s664_s0 + $0x30] sm:$0xff]   ;;  %v518_v14 = vld [vmem:[%s664_s0 + $0x18] sm:$0xff]  }
   0x6   :  { %v522_v15 = vld [vmem:[%s664_s0 + $0x38] sm:$0xff]  }
   0x7   :  { %461 = vmatpush3.bf16.msra.mxu0 %v508_v1  ;;  %499 = vmatpush3.bf16.msra.mxu1 %v508_v1 }
   0x8   :  { %462 = vmatprep.subr.bf16.mxu0 %v509_v2  ;;  %492 = vmatprep.subr.bf16.mxu1 %v509_v2 }
   0xb   :  { %463 = vmatpush3.bf16.msra.mxu0 %v509_v2  ;;  %500 = vmatpush3.bf16.msra.mxu1 %v509_v2 }
   0xc   :  { %464 = vmatprep.subr.bf16.mxu0 %v510_v3  ;;  %493 = vmatprep.subr.bf16.mxu1 %v510_v3 }
   0xf   :  { %465 = vmatpush3.bf16.msra.mxu0 %v510_v3  ;;  %501 = vmatpush3.bf16.msra.mxu1 %v510_v3 }
  0x10   :  { %466 = vmatprep.subr.bf16.mxu0 %v511_v5  ;;  %494 = vmatprep.subr.bf16.mxu1 %v511_v5 }
  0x13   :  { %467 = vmatpush3.bf16.msra.mxu0 %v511_v5  ;;  %502 = vmatpush3.bf16.msra.mxu1 %v511_v5 }
  0x14   :  { %468 = vmatprep.subr.bf16.mxu0 %v512_v7  ;;  %495 = vmatprep.subr.bf16.mxu1 %v512_v7 }
  0x17   :  { %469 = vmatpush3.bf16.msra.mxu0 %v512_v7  ;;  %503 = vmatpush3.bf16.msra.mxu1 %v512_v7 }
  0x18   :  { %470 = vmatprep.subr.bf16.mxu0 %v513_v8  ;;  %496 = vmatprep.subr.bf16.mxu1 %v513_v8 }
  0x1b   :  { %471 = vmatpush3.bf16.msra.mxu0 %v513_v8  ;;  %504 = vmatpush3.bf16.msra.mxu1 %v513_v8 }
  0x1c   :  { %472 = vmatprep.subr.bf16.mxu0 %v514_v9  ;;  %497 = vmatprep.subr.bf16.mxu1 %v514_v9 }
  0x1f   :  { %473 = vmatpush3.bf16.msra.mxu0 %v514_v9  ;;  %505 = vmatpush3.bf16.msra.mxu1 %v514_v9 }
  0x22   :  { %475 = vmatmul.mubr.bf16.vlgmr.msra.gmra.mrb[0].mxu0 %v516_v10  ;;  %483 = vmatmul.mubr.bf16.vlgmr.msra.gmra.mrb[0].mxu1 %v520_v11 }
  0x23   :  { %478 = vmatprep.mubr.bf16.mxu0 %v517_v12  ;;  %486 = vmatprep.mubr.bf16.mxu1 %v521_v13 }
  0x2a   :  { %479 = vmatmul.mubr.bf16.gmra.mrb[4].mxu0 %v518_v14  ;;  %487 = vmatmul.mubr.bf16.gmra.mrb[4].mxu1 %v522_v15 }
  0xf5   :  { %v476_v17 = vpop.f32.mrb[0].mxu0  ;;  %v484_v18 = vpop.f32.mrb[0].mxu1 }
  0xf6   :  { %336 = vst [vmem:[%s667_s2 + $0x10] sm:$0xff] %v476_v17  ;;  %v220_v19 = vpop.f32.mrb[1].mxu0  ;;  %344 = vst [vmem:[%s667_s2 + $0x50] sm:$0xff] %v484_v18  ;;  %v252_v20 = vpop.f32.mrb[1].mxu1  ;;  %v377_v28 = vmul.f32 %v476_v17, %v476_v17  ;;  %v385_v60 = vmul.f32 %v484_v18, %v484_v18 }
  0xf7   :  { %334 = vst [vmem:[%s667_s2] sm:$0xff] %v220_v19  ;;  %v477_v21 = vpop.f32.mrb[2].mxu0  ;;  %342 = vst [vmem:[%s667_s2 + $0x40] sm:$0xff] %v252_v20  ;;  %v485_v22 = vpop.f32.mrb[2].mxu1  ;;  %v375_v25 = vmul.f32 %v220_v19, %v220_v19  ;;  %v383_v54 = vmul.f32 %v252_v20, %v252_v20 }
  0xf8   :  { %337 = vst [vmem:[%s667_s2 + $0x18] sm:$0xff] %v477_v21  ;;  %v223_v23 = vpop.f32.mrb[3].mxu0  ;;  %345 = vst [vmem:[%s667_s2 + $0x58] sm:$0xff] %v485_v22  ;;  %v255_v24 = vpop.f32.mrb[3].mxu1  ;;  %v378_v31 = vmul.f32 %v477_v21, %v477_v21  ;;  %v386_v63 = vmul.f32 %v485_v22, %v485_v22 }
  0xf9   :  { %335 = vst [vmem:[%s667_s2 + $0x8] sm:$0xff] %v223_v23  ;;  %v351_v26 = vadd.f32 %v223_v23, %v220_v19  ;;  %v376_v27 = vmul.f32 %v223_v23, %v223_v23  ;;  %343 = vst [vmem:[%s667_s2 + $0x48] sm:$0xff] %v255_v24  ;;  %v384_v59 = vmul.f32 %v255_v24, %v255_v24 }
  0xfb   :  { %v352_v29 = vadd.f32 %v476_v17, %v351_v26  ;;  %v391_v30 = vadd.f32 %v376_v27, %v375_v25  ;;  %v374_v27 = vld [vmem:[%s666_s4] sm:$0x1] }
  0xfd   :  { %v392_v32 = vadd.f32 %v391_v30, %v377_v28  ;;  %v480_v33 = vpop.f32.mrb[4].mxu0  ;;  %v353_v34 = vadd.f32 %v477_v21, %v352_v29  ;;  %v488_v35 = vpop.f32.mrb[4].mxu1 }
  0xfe   :  { %340 = vst [vmem:[%s667_s2 + $0x30] sm:$0xff] %v480_v33  ;;  %v236_v36 = vpop.f32.mrb[5].mxu0  ;;  %348 = vst [vmem:[%s667_s2 + $0x70] sm:$0xff] %v488_v35  ;;  %v268_v37 = vpop.f32.mrb[5].mxu1  ;;  %v381_v48 = vmul.f32 %v480_v33, %v480_v33  ;;  %v389_v8 = vmul.f32 %v488_v35, %v488_v35 }
  0xff   :  { %338 = vst [vmem:[%s667_s2 + $0x20] sm:$0xff] %v236_v36  ;;  %v354_v38 = vadd.f32 %v353_v34, %v236_v36  ;;  %v379_v39 = vmul.f32 %v236_v36, %v236_v36  ;;  %v393_v40 = vadd.f32 %v392_v32, %v378_v31  ;;  %v481_v41 = vpop.f32.mrb[6].mxu0  ;;  %346 = vst [vmem:[%s667_s2 + $0x60] sm:$0xff] %v268_v37  ;;  %v489_v42 = vpop.f32.mrb[6].mxu1 }
 0x100   :  { %341 = vst [vmem:[%s667_s2 + $0x38] sm:$0xff] %v481_v41  ;;  %v239_v43 = vpop.f32.mrb[7].mxu0  ;;  %349 = vst [vmem:[%s667_s2 + $0x78] sm:$0xff] %v489_v42  ;;  %v271_v44 = vpop.f32.mrb[7].mxu1  ;;  %v382_v51 = vmul.f32 %v481_v41, %v481_v41  ;;  %v387_v2 = vmul.f32 %v268_v37, %v268_v37  ;;  %v390_v11 = vmul.f32 %v489_v42, %v489_v42 }
 0x101   :  { %v394_v45 = vadd.f32 %v393_v40, %v379_v39  ;;  %339 = vst [vmem:[%s667_s2 + $0x28] sm:$0xff] %v239_v43  ;;  %v355_v46 = vadd.f32 %v354_v38, %v239_v43  ;;  %v380_v47 = vmul.f32 %v239_v43, %v239_v43  ;;  %347 = vst [vmem:[%s667_s2 + $0x68] sm:$0xff] %v271_v44 }
 0x102   :  { %v388_v7 = vmul.f32 %v271_v44, %v271_v44 }
 0x103   :  { %v356_v49 = vadd.f32 %v480_v33, %v355_v46  ;;  %v395_v50 = vadd.f32 %v394_v45, %v380_v47 }
 0x105   :  { %v396_v52 = vadd.f32 %v395_v50, %v381_v48  ;;  %v357_v53 = vadd.f32 %v481_v41, %v356_v49 }
 0x107   :  { %v358_v55 = vadd.f32 %v357_v53, %v252_v20  ;;  %v397_v56 = vadd.f32 %v396_v52, %v382_v51 }
 0x109   :  { %v398_v57 = vadd.f32 %v397_v56, %v383_v54  ;;  %v359_v58 = vadd.f32 %v358_v55, %v255_v24  ;;  %v350_v24 = vld [vmem:[%s665_s3] sm:$0x1] }
 0x10b   :  { %v360_v61 = vadd.f32 %v484_v18, %v359_v58  ;;  %v399_v62 = vadd.f32 %v398_v57, %v384_v59 }
 0x10d   :  { %v400_v0 = vadd.f32 %v399_v62, %v385_v60  ;;  %v361_v1 = vadd.f32 %v485_v22, %v360_v61 }
 0x10f   :  { %v362_v3 = vadd.f32 %v361_v1, %v268_v37  ;;  %v401_v4 = vadd.f32 %v400_v0, %v386_v63 }
 0x111   :  { %v402_v5 = vadd.f32 %v401_v4, %v387_v2  ;;  %v363_v6 = vadd.f32 %v362_v3, %v271_v44 }
 0x113   :  { %v364_v9 = vadd.f32 %v488_v35, %v363_v6  ;;  %v403_v10 = vadd.f32 %v402_v5, %v388_v7 }
 0x115   :  { %v365_v12 = vadd.f32 %v489_v42, %v364_v9  ;;  %v404_v13 = vadd.f32 %v403_v10, %v389_v8 }
 0x117   :  { %v366_v14 = vrot.slane %v365_v12, 4  ;;  %v405_v15 = vadd.f32 %v404_v13, %v390_v11 }
 0x119   :  { %v367_v16 = vadd.f32 %v366_v14, %v365_v12  ;;  %v406_v17 = vrot.slane %v405_v15, 4 }
 0x11b   :  { %v368_v18 = vrot.slane %v367_v16, 2  ;;  %v407_v19 = vadd.f32 %v406_v17, %v405_v15 }
 0x11d   :  { %v369_v20 = vadd.f32 %v368_v18, %v367_v16  ;;  %v408_v21 = vrot.slane %v407_v19, 2 }
 0x11f   :  { %v370_v22 = vrot.slane %v369_v20, 1  ;;  %v409_v23 = vadd.f32 %v408_v21, %v407_v19 }
 0x121   :  { %v371_v25 = vadd.f32 %v370_v22, %v369_v20  ;;  %v410_v26 = vrot.slane %v409_v23, 1 }
 0x123   :  { %v372_v28 = vadd.f32 %v371_v25, %v350_v24  ;;  %v411_v29 = vadd.f32 %v410_v26, %v409_v23 }
 0x125   :  { %373 = vst [vmem:[%s665_s3] sm:$0x1] %v372_v28  ;;  %v412_v30 = vadd.f32 %v411_v29, %v374_v27 }
 0x127   :  { %413 = vst [vmem:[%s666_s4] sm:$0x1] %v412_v30 }

// kernel: _lambda_.9
= control target key start
LH: loop header
LB: loop body
LE: loop exit
PB: predicated region body
PF: predicated region fallthrough
CT: control target
= control target key end

     0   :  { %s188_s0 = inlined_call_operand.vmem [shape: f32[56,128], index: 0, kind: input, shape index: {}]   ;;  %s189_s1 = inlined_call_operand.vmem [shape: f32[1,128], index: 1, kind: input, shape index: {}]   ;;  %s190_s2 = inlined_call_operand.vmem [shape: f32[1,128], index: 2, kind: input, shape index: {}]   ;;  %s191_s3 = inlined_call_operand.vmem [shape: bf16[56,128], index: 3, kind: output, shape index: {}]  }
   0x1   :  { %v14_v0 = vld [vmem:[%s188_s0] sm:$0xff]  ;;  %v15_v1 = vld [vmem:[%s188_s0 + $0x8] sm:$0xff]  ;;  %v16_v6 = vld [vmem:[%s188_s0 + $0x10] sm:$0xff] }
   0x2   :  { %v96_v2 = vld [vmem:[%s189_s1] ss:$0 sm:$0xff]  ;;  %v17_v7 = vld [vmem:[%s188_s0 + $0x18] sm:$0xff]  ;;  %v19_v11 = vld [vmem:[%s188_s0 + $0x28] sm:$0xff] }
   0x3   :  { %v28_v3 = vmul.f32 %v96_v2, %v14_v0  ;;  %v29_v4 = vmul.f32 %v96_v2, %v15_v1  ;;  %v97_v5 = vld [vmem:[%s190_s2] ss:$0 sm:$0xff]  ;;  %v30_v8 = vmul.f32 %v96_v2, %v16_v6  ;;  %v31_v9 = vmul.f32 %v96_v2, %v17_v7  ;;  %v20_v12 = vld [vmem:[%s188_s0 + $0x30] sm:$0xff] }
   0x4   :  { %v18_v10 = vld [vmem:[%s188_s0 + $0x20] sm:$0xff]  ;;  %v33_v16 = vmul.f32 %v96_v2, %v19_v11  ;;  %v34_v19 = vmul.f32 %v96_v2, %v20_v12 }
   0x5   :  { %v42_v13 = vadd.f32 %v97_v5, %v28_v3  ;;  %v43_v14 = vadd.f32 %v97_v5, %v29_v4  ;;  %v32_v15 = vmul.f32 %v96_v2, %v18_v10  ;;  %v44_v17 = vadd.f32 %v97_v5, %v30_v8 }
   0x6   :  { %v45_v18 = vadd.f32 %v97_v5, %v31_v9  ;;  %v47_v23 = vadd.f32 %v97_v5, %v33_v16  ;;  %v48_v26 = vadd.f32 %v97_v5, %v34_v19 }
   0x7   :  { %v49_v20 = vmax.f32 %v42_v13, 0.0  ;;  %v50_v21 = vmax.f32 %v43_v14, 0.0  ;;  %v46_v22 = vadd.f32 %v97_v5, %v32_v15  ;;  %v51_v24 = vmax.f32 %v44_v17, 0.0 }
   0x8   :  { %v52_v25 = vmax.f32 %v45_v18, 0.0  ;;  %v54_v29 = vmax.f32 %v47_v23, 0.0  ;;  %v55_v31 = vmax.f32 %v48_v26, 0.0 }
   0x9   :  { %v115_v27 = vpack.c.bf16 %v50_v21, %v49_v20  ;;  %v53_v28 = vmax.f32 %v46_v22, 0.0 }
   0xa   :  { %v120_v30 = vpack.c.bf16 %v52_v25, %v51_v24  ;;  %v111_v33 = vpack.c.bf16 %v55_v31, %v55_v31 }
   0xb   :  { %116 = vst [vmem:[%s191_s3] sm:$0xff] %v115_v27   ;;  %v125_v32 = vpack.c.bf16 %v54_v29, %v53_v28 }
   0xc   :  { %127 = vst [vmem:[%s191_s3 + $0x8] sm:$0xff] %v120_v30   ;;  %91 = vst [vmem:[%s191_s3 + $0x18] sm:$0xf] %v111_v33 }
   0xd   :  { %128 = vst [vmem:[%s191_s3 + $0x10] sm:$0xff] %v125_v32  }

// kernel: _lambda_.8
= control target key start
LH: loop header
LB: loop body
LE: loop exit
PB: predicated region body
PF: predicated region fallthrough
CT: control target
= control target key end

     0   :  { %s1351_s15 = smov 0   ;;  %s1353_s16 = smov 0   ;;  %s1508_s0 = inlined_call_operand.vmem [shape: bf16[56,2048], index: 0, kind: input, shape index: {}]   ;;  %s1509_s1 = inlined_call_operand.vmem [shape: bf16[2048,128], index: 1, kind: input, shape index: {}]   ;;  %s1510_s2 = inlined_call_operand.vmem [shape: f32[56,128], index: 2, kind: output, shape index: {0}]   ;;  %s1511_s3 = inlined_call_operand.vmem [shape: f32[1,128], index: 3, kind: output, shape index: {1}]   ;;  %s1512_s4 = inlined_call_operand.vmem [shape: f32[1,128], index: 4, kind: output, shape index: {2}]  }
   0x1   :  { %s1355_s17 = smov 0   ;;  %s1357_s18 = smov 0  }
   0x2   :  { %s1359_s19 = smov 0  }
   0x3 LB: > { %s27_s20 = sadd.s32 1, %s1318_s18  ;;  %p50_p1 = scmp.ne.s32.totalorder %s1310_s16, %s1306_s15  ;;  %s1322_s19 = sphi %s1359_s19, %s15_s19   ;;  %s1318_s18 = sphi %s1357_s18, %s1516_s18   ;;  %s1314_s17 = sphi %s1355_s17, %s1515_s17   ;;  %s1310_s16 = sphi %s1353_s16, %s1514_s16   ;;  %s1306_s15 = sphi %s1351_s15, %s1513_s15  }
   0x4   : > { %p28_p0 = scmp.ge.s32.totalorder %s27_s20, 4  ;;  %p51_p2 = scmp.eq.s32.totalorder %s1322_s19, 0 }
   0x5   : > { %s43_s22 = sadd.s32 1, %s1310_s16  ;;  %p1041_p5 = scmp.ge.s32.totalorder %s1322_s19, 4 }
   0x6   : > { %s1518_s20 = smov (%p28_p0, %s27_s20), 0  ;;  %p52_p3 = por %p51_p2, %p50_p1 }
   0x7   : > { %s39_s21 = ssub.s32 %s1318_s18, %s1518_s20  ;;  %184 = sbr.rel (%p1041_p5) target bundleno = 25 (0x19), region = 16 }
   0x8   : > { %p41_p4 = scmp.eq.s32.totalorder %s39_s21, 0 }
   0xa   : > { %s1386_s23 = scalar_select %p41_p4, %s1310_s16, %s43_s22  }
   0xe   : > { %187 = sbr.rel (!%p52_p3) target bundleno = 25 (0x19), region = 20  ;;  %s189_s24 = sand.u32 (%p52_p3), 1, %s1310_s16  }
   0xf   : > { %s1104_s25 = sshll.u32 (%p52_p3), %s1318_s18, 4  ;;  %s1186_s26 = smul.u32 (%p52_p3), 112, %s189_s24 }
  0x10   : > { %s197_s29 = scalar_lea.vmem (%p52_p3), %s1508_s0, %s1104_s25 }
  0x11   : > { %v210_v0 = vld [vmem:[%s197_s29] sm:$0xff] (%p52_p3)  ;;  %v212_v1 = vld [vmem:[%s197_s29 + $0x8] sm:$0xff] (%p52_p3)  ;;  %s191_s30 = scalar_lea.vmem (%p52_p3), [#allocation3], %s1186_s26 }
  0x12   : > { %v214_v2 = vld [vmem:[%s197_s29 + $0x40] sm:$0xff] (%p52_p3)  ;;  %v216_v3 = vld [vmem:[%s197_s29 + $0x48] sm:$0xff] (%p52_p3)  ;;  %211 = vst [vmem:[%s191_s30] sm:$0xff] (%p52_p3), %v210_v0  ;;  %213 = vst [vmem:[%s191_s30 + $0x8] sm:$0xff] (%p52_p3), %v212_v1 }
  0x13   : > { %v218_v4 = vld [vmem:[%s197_s29 + $0x80] sm:$0xff] (%p52_p3)  ;;  %v220_v5 = vld [vmem:[%s197_s29 + $0x88] sm:$0xff] (%p52_p3)  ;;  %215 = vst [vmem:[%s191_s30 + $0x10] sm:$0xff] (%p52_p3), %v214_v2  ;;  %217 = vst [vmem:[%s191_s30 + $0x18] sm:$0xff] (%p52_p3), %v216_v3 }
  0x14   : > { %219 = vst [vmem:[%s191_s30 + $0x20] sm:$0xff] (%p52_p3), %v218_v4  ;;  %221 = vst [vmem:[%s191_s30 + $0x28] sm:$0xff] (%p52_p3), %v220_v5  ;;  %v222_v6 = vld [vmem:[%s197_s29 + $0xc0] sm:$0xff] (%p52_p3)  ;;  %v224_v7 = vld [vmem:[%s197_s29 + $0xc8] sm:$0xff] (%p52_p3) }
  0x15   : > { %v226_v8 = vld [vmem:[%s197_s29 + $0x100] sm:$0xff]  ;;  %223 = vst [vmem:[%s191_s30 + $0x30] sm:$0xff] %v222_v6  ;;  %225 = vst [vmem:[%s191_s30 + $0x38] sm:$0xff] %v224_v7  ;;  %v228_v9 = vld [vmem:[%s197_s29 + $0x108] sm:$0xff] }
  0x16   : > { %227 = vst [vmem:[%s191_s30 + $0x40] sm:$0xff] %v226_v8  ;;  %v230_v10 = vld [vmem:[%s197_s29 + $0x140] sm:$0xff]  ;;  %v232_v11 = vld [vmem:[%s197_s29 + $0x148] sm:$0xff]  ;;  %229 = vst [vmem:[%s191_s30 + $0x48] sm:$0xff] %v228_v9 }
  0x17   : > { %231 = vst [vmem:[%s191_s30 + $0x50] sm:$0xff] %v230_v10  ;;  %233 = vst [vmem:[%s191_s30 + $0x58] sm:$0xff] %v232_v11  ;;  %v234_v12 = vld [vmem:[%s197_s29 + $0x180] sm:$0xff]  ;;  %v236_v13 = vld [vmem:[%s197_s29 + $0x188] sm:$0xff] }
  0x18   : > { %235 = vst [vmem:[%s191_s30 + $0x60] sm:$0xff] %v234_v12  ;;  %237 = vst [vmem:[%s191_s30 + $0x68] sm:$0xff] %v236_v13 }
  0x19 PF: > { %p1044_p6 = scmp.ge.s32.totalorder %s1322_s19, 1  ;;  %p254_p7 = scmp.lt.s32.totalorder %s1322_s19, 5 }
  0x1b   : > { %p255_p8 = pnand %p1044_p6, %p254_p7 }
  0x1c   : > { %s261_s5 = sand.u32 (!%p255_p8), 1, %s1306_s15   ;;  %s1045_s6 = sshll.u32 (!%p255_p8), %s1314_s17, 6 }
  0x1d   : > { %258 = sbr.rel (%p255_p8) target bundleno = 357 (0x165), region = 47  ;;  %p306_p9 = scmp.lt.s32.totalorder (!%p255_p8), %s1045_s6, 255 }
  0x1e   : > { %s1187_s7 = smul.u32 (!%p255_p8), 112, %s261_s5  ;;  %p331_p10 = scmp.eq.s32.totalorder (!%p255_p8), %s1314_s17, 0 }
  0x20   : > { %s1404_s12 = scalar_lea.vmem (!%p255_p8), [#allocation3], %s1187_s7 }
  0x24   : > { %s1520_s6 = smov (!%p306_p9, %s1045_s6), 255  ;;  %335 = sbr.rel (!%p331_p10) target bundleno = 43 (0x2b), region = 55 }
  0x25   : > { %s1046_s8 = sshll.u32 %s1520_s6, 2  ;;  %v1324_v14 = vmov (%p331_p10), 0.0  }
  0x26   : > { %s1402_s11 = scalar_lea.vmem %s1509_s1, %s1046_s8  ;;  %336 = vst [vmem:[%s1511_s3] sm:$0x1] (%p331_p10), %v1324_v14  ;;  %337 = vst [vmem:[%s1512_s4] sm:$0x1] (%p331_p10), %v1324_v14 }
  0x2b PF: > { %p1048_p11 = scmp.ne.s32.totalorder %s1314_s17, 0 }
  0x2c   : > { %v1325_v15 = vmov (!%p1048_p11), 0.0  }
  0x2d   : > { %340 = sbr.rel (%p1048_p11) target bundleno = 52 (0x34), region = 59  ;;  %341 = vst [vmem:[#allocation2] sm:$0xff] (!%p1048_p11), %v1325_v15  ;;  %342 = vst [vmem:[#allocation2 + $0x8] sm:$0xff] (!%p1048_p11), %v1325_v15 }
  0x2e   : > { %343 = vst [vmem:[#allocation2 + $0x10] sm:$0xff] (!%p1048_p11), %v1325_v15  ;;  %344 = vst [vmem:[#allocation2 + $0x18] sm:$0xff] (!%p1048_p11), %v1325_v15 }
  0x2f   : > { %345 = vst [vmem:[#allocation2 + $0x20] sm:$0xff] (!%p1048_p11), %v1325_v15  ;;  %346 = vst [vmem:[#allocation2 + $0x28] sm:$0xff] (!%p1048_p11), %v1325_v15 }
  0x30   : > { %347 = vst [vmem:[#allocation2 + $0x30] sm:$0xff] (!%p1048_p11), %v1325_v15 }
  0x34 PF: > { %v1230_v16 = vld [vmem:[%s1402_s11 + $0x40] sm:$0xff]   ;;  %v1234_v20 = vld [vmem:[%s1402_s11 + $0x48] sm:$0xff]   ;;  %v1238_v24 = vld [vmem:[%s1402_s11 + $0x50] sm:$0xff]   ;;  %p1097_p12 = scmp.ne.s32.totalorder %s1314_s17, 3 }
  0x35   : > { %v1231_v17 = vld [vmem:[%s1402_s11 + $0xc0] sm:$0xff]   ;;  %1106 = vmatprep.subr.bf16.mxu0 %v1230_v16  ;;  %v1235_v21 = vld [vmem:[%s1402_s11 + $0xc8] sm:$0xff]   ;;  %v1239_v25 = vld [vmem:[%s1402_s11 + $0xd0] sm:$0xff]  }
  0x36   : > { %v1232_v18 = vld [vmem:[%s1402_s11] sm:$0xff]   ;;  %1146 = vmatprep.subr.bf16.mxu1 %v1231_v17  ;;  %v1236_v22 = vld [vmem:[%s1402_s11 + $0x8] sm:$0xff]   ;;  %v1240_v26 = vld [vmem:[%s1402_s11 + $0x10] sm:$0xff]  }
  0x37   : > { %v1233_v19 = vld [vmem:[%s1402_s11 + $0x80] sm:$0xff]   ;;  %1107 = vmatpush3.bf16.msra.mxu0 %v1232_v18  ;;  %v1237_v23 = vld [vmem:[%s1402_s11 + $0x88] sm:$0xff]   ;;  %v1241_v27 = vld [vmem:[%s1402_s11 + $0x90] sm:$0xff]  }
  0x38   : > { %1147 = vmatpush3.bf16.msra.mxu1 %v1233_v19  ;;  %1108 = vmatprep.subr.bf16.mxu0 %v1234_v20  ;;  %v1242_v28 = vld [vmem:[%s1402_s11 + $0x58] sm:$0xff]   ;;  %v1246_v32 = vld [vmem:[%s1402_s11 + $0x60] sm:$0xff]   ;;  %v1250_v36 = vld [vmem:[%s1402_s11 + $0x68] sm:$0xff]  }
  0x39   : > { %1148 = vmatprep.subr.bf16.mxu1 %v1235_v21  ;;  %v1243_v29 = vld [vmem:[%s1402_s11 + $0xd8] sm:$0xff]   ;;  %v1247_v33 = vld [vmem:[%s1402_s11 + $0xe0] sm:$0xff]   ;;  %v1251_v37 = vld [vmem:[%s1402_s11 + $0xe8] sm:$0xff]  }
  0x3a   : > { %v1244_v30 = vld [vmem:[%s1402_s11 + $0x18] sm:$0xff]   ;;  %v1248_v34 = vld [vmem:[%s1402_s11 + $0x20] sm:$0xff]   ;;  %v1252_v38 = vld [vmem:[%s1402_s11 + $0x28] sm:$0xff]  }
  0x3b   : > { %1109 = vmatpush3.bf16.msra.mxu0 %v1236_v22  ;;  %v1245_v31 = vld [vmem:[%s1402_s11 + $0x98] sm:$0xff]   ;;  %v1249_v35 = vld [vmem:[%s1402_s11 + $0xa0] sm:$0xff]   ;;  %v1253_v39 = vld [vmem:[%s1402_s11 + $0xa8] sm:$0xff]  }
  0x3c   : > { %1149 = vmatpush3.bf16.msra.mxu1 %v1237_v23  ;;  %1110 = vmatprep.subr.bf16.mxu0 %v1238_v24  ;;  %v1254_v40 = vld [vmem:[%s1402_s11 + $0x70] sm:$0xff]   ;;  %v1258_v44 = vld [vmem:[%s1402_s11 + $0x78] sm:$0xff]   ;;  %v348_v11 = vld [vmem:[#allocation2] sm:$0xff] }
  0x3d   : > { %1150 = vmatprep.subr.bf16.mxu1 %v1239_v25  ;;  %v1255_v41 = vld [vmem:[%s1402_s11 + $0xf0] sm:$0xff]   ;;  %v1259_v45 = vld [vmem:[%s1402_s11 + $0xf8] sm:$0xff]   ;;  %v349_v16 = vld [vmem:[#allocation2 + $0x8] sm:$0xff] }
  0x3e   : > { %v1256_v42 = vld [vmem:[%s1402_s11 + $0x30] sm:$0xff]   ;;  %v1260_v46 = vld [vmem:[%s1402_s11 + $0x38] sm:$0xff]  }
  0x3f   : > { %1111 = vmatpush3.bf16.msra.mxu0 %v1240_v26  ;;  %v1257_v43 = vld [vmem:[%s1402_s11 + $0xb0] sm:$0xff]   ;;  %v1261_v47 = vld [vmem:[%s1402_s11 + $0xb8] sm:$0xff]  }
  0x40   : > { %1151 = vmatpush3.bf16.msra.mxu1 %v1241_v27  ;;  %1112 = vmatprep.subr.bf16.mxu0 %v1242_v28  ;;  %v1262_v48 = vld [vmem:[%s1404_s12] ss:$16 sps:$4 sm:$0xff]   ;;  %v1264_v49 = vld [vmem:[%s1404_s12 + $0x4] ss:$16 sps:$4 sm:$0xff]   ;;  %v1265_v50 = vld [vmem:[%s1404_s12 + $0x8] ss:$16 sps:$4 sm:$0xff]  }
  0x41   : > { %1152 = vmatprep.subr.bf16.mxu1 %v1243_v29  ;;  %v1267_v51 = vld [vmem:[%s1404_s12 + $0xc] ss:$16 sps:$4 sm:$0xff]   ;;  %731 = vmatprep.mubr.bf16.mxu0 %v1264_v49  ;;  %v1268_v52 = vld [vmem:[%s1404_s12 + $0x24] ss:$16 sps:$4 sm:$0xff]   ;;  %v1272_v54 = vld [vmem:[%s1404_s12 + $0x20] ss:$16 sps:$4 sm:$0xff]  }
  0x42   : > { %795 = vmatprep.mubr.bf16.mxu1 %v1267_v51  ;;  %v1270_v53 = vld [vmem:[%s1404_s12 + $0x2c] ss:$16 sps:$4 sm:$0xff]   ;;  %v1273_v55 = vld [vmem:[%s1404_s12 + $0x28] ss:$16 sps:$4 sm:$0xff]   ;;  %v1274_v56 = vld [vmem:[%s1404_s12 + $0x44] ss:$16 sps:$4 sm:$0xff]  }
  0x43   : > { %1113 = vmatpush3.bf16.msra.mxu0 %v1244_v30  ;;  %v1276_v57 = vld [vmem:[%s1404_s12 + $0x4c] ss:$16 sps:$4 sm:$0xff]   ;;  %v367_v58 = vld [vmem:[%s1404_s12 + $0x60] sm:$0xff]  ;;  %v1279_v61 = vld [vmem:[%s1404_s12 + $0x48] ss:$16 sps:$4 sm:$0xff]  }
  0x44   : > { %1153 = vmatpush3.bf16.msra.mxu1 %v1245_v31  ;;  %1114 = vmatprep.subr.bf16.mxu0 %v1246_v32  ;;  %v368_v59 = vld [vmem:[%s1404_s12 + $0x68] sm:$0xff]  ;;  %v1278_v60 = vld [vmem:[%s1404_s12 + $0x40] ss:$16 sps:$4 sm:$0xff]   ;;  %v1062_v62 = vcombine.high %v367_v58, %v367_v58  ;;  %v1061_v0 = vcombine.low %v367_v58, %v367_v58 }
  0x45   : > { %1154 = vmatprep.subr.bf16.mxu1 %v1247_v33  ;;  %v1064_v63 = vcombine.high %v368_v59, %v368_v59  ;;  %v1063_v1 = vcombine.low %v368_v59, %v368_v59  ;;  %v350_v29 = vld [vmem:[#allocation2 + $0x10] sm:$0xff] }
  0x47   : > { %1115 = vmatpush3.bf16.msra.mxu0 %v1248_v34  ;;  %v351_v34 = vld [vmem:[#allocation2 + $0x18] sm:$0xff] }
  0x48   : > { %1155 = vmatpush3.bf16.msra.mxu1 %v1249_v35  ;;  %1116 = vmatprep.subr.bf16.mxu0 %v1250_v36 }
  0x49   : > { %1156 = vmatprep.subr.bf16.mxu1 %v1251_v37 }
  0x4b   : > { %1117 = vmatpush3.bf16.msra.mxu0 %v1252_v38 }
  0x4c   : > { %1157 = vmatpush3.bf16.msra.mxu1 %v1253_v39  ;;  %1118 = vmatprep.subr.bf16.mxu0 %v1254_v40 }
  0x4d   : > { %1158 = vmatprep.subr.bf16.mxu1 %v1255_v41 }
  0x4f   : > { %1119 = vmatpush3.bf16.msra.mxu0 %v1256_v42 }
  0x50   : > { %1159 = vmatpush3.bf16.msra.mxu1 %v1257_v43  ;;  %1120 = vmatprep.subr.bf16.mxu0 %v1258_v44 }
  0x51   : > { %1160 = vmatprep.subr.bf16.mxu1 %v1259_v45 }
  0x53   : > { %1121 = vmatpush3.bf16.msra.mxu0 %v1260_v46 }
  0x54   : > { %1161 = vmatpush3.bf16.msra.mxu1 %v1261_v47  ;;  %v352_v47 = vld [vmem:[#allocation2 + $0x20] sm:$0xff] }
  0x56   : > { %732 = vmatmul.mubr.bf16.vlgmr.msra.gmra.mrb[0].mxu0 %v1262_v48 }
  0x57   : > { %796 = vmatmul.mubr.bf16.vlgmr.msra.gmra.mrb[0].mxu1 %v1265_v50  ;;  %739 = vmatprep.mubr.bf16.mxu0 %v1268_v52  ;;  %v353_v52 = vld [vmem:[#allocation2 + $0x28] sm:$0xff] }
  0x58   : > { %803 = vmatprep.mubr.bf16.mxu1 %v1270_v53 }
  0x5e   : > { %740 = vmatmul.mubr.bf16.gmra.mrb[4].mxu0 %v1272_v54 }
  0x5f   : > { %804 = vmatmul.mubr.bf16.gmra.mrb[4].mxu1 %v1273_v55  ;;  %747 = vmatprep.mubr.bf16.mxu0 %v1274_v56 }
  0x60   : > { %811 = vmatprep.mubr.bf16.mxu1 %v1276_v57 }
  0x66   : > { %748 = vmatmul.mubr.bf16.gmra.mrb[8].mxu0 %v1278_v60 }
  0x67   : > { %812 = vmatmul.mubr.bf16.gmra.mrb[8].mxu1 %v1279_v61  ;;  %755 = vmatprep.mubr.bf16.mxu0 %v1062_v62 }
  0x68   : > { %819 = vmatprep.mubr.bf16.mxu1 %v1064_v63 }
  0x6e   : > { %756 = vmatmul.mubr.bf16.gmra.mrb[12].mxu0 %v1061_v0 }
  0x6f   : > { %820 = vmatmul.mubr.bf16.gmra.mrb[12].mxu1 %v1063_v1  ;;  %v354_v1 = vld [vmem:[#allocation2 + $0x30] sm:$0xff] }
 0x129   : > { %v1122_v2 = vpop.f32.mrb[0].mxu0 }
 0x12a   : > { %v1162_v3 = vpop.f32.mrb[0].mxu1  ;;  %v1123_v4 = vpop.f32.mrb[1].mxu0 }
 0x12b   : > { %v1124_v5 = vadd.f32 %v1123_v4, %v1122_v2  ;;  %v1163_v6 = vpop.f32.mrb[1].mxu1  ;;  %v1125_v7 = vpop.f32.mrb[2].mxu0 }
 0x12c   : > { %v1164_v8 = vadd.f32 %v1163_v6, %v1162_v3  ;;  %v1165_v9 = vpop.f32.mrb[2].mxu1  ;;  %v1126_v10 = vpop.f32.mrb[3].mxu0 }
 0x12d   : > { %v1127_v12 = vadd.f32 %v1126_v10, %v1125_v7  ;;  %v1166_v13 = vpop.f32.mrb[3].mxu1 }
 0x12e   : > { %v798_v14 = vadd.f32 %v1164_v8, %v1124_v5  ;;  %v1167_v15 = vadd.f32 %v1166_v13, %v1165_v9 }
 0x130   : > { %v827_v17 = vadd.f32 %v798_v14, %v348_v11  ;;  %v801_v18 = vadd.f32 %v1167_v15, %v1127_v12 }
 0x131   : > { %v1128_v19 = vpop.f32.mrb[4].mxu0 }
 0x132   : > { %834 = vst [vmem:[#allocation2] sm:$0xff] %v827_v17  ;;  %v828_v20 = vadd.f32 %v801_v18, %v349_v16  ;;  %v1168_v21 = vpop.f32.mrb[4].mxu1  ;;  %v1129_v22 = vpop.f32.mrb[5].mxu0 }
 0x133   : > { %v1130_v23 = vadd.f32 %v1129_v22, %v1128_v19  ;;  %v1169_v24 = vpop.f32.mrb[5].mxu1  ;;  %v1131_v25 = vpop.f32.mrb[6].mxu0 }
 0x134   : > { %835 = vst [vmem:[#allocation2 + $0x8] sm:$0xff] %v828_v20  ;;  %v1170_v26 = vadd.f32 %v1169_v24, %v1168_v21  ;;  %v1171_v27 = vpop.f32.mrb[6].mxu1  ;;  %v1132_v28 = vpop.f32.mrb[7].mxu0 }
 0x135   : > { %v1133_v30 = vadd.f32 %v1132_v28, %v1131_v25  ;;  %v1172_v31 = vpop.f32.mrb[7].mxu1 }
 0x136   : > { %v806_v32 = vadd.f32 %v1170_v26, %v1130_v23  ;;  %v1173_v33 = vadd.f32 %v1172_v31, %v1171_v27 }
 0x138   : > { %v829_v35 = vadd.f32 %v806_v32, %v350_v29  ;;  %v809_v36 = vadd.f32 %v1173_v33, %v1133_v30 }
 0x139   : > { %v1134_v37 = vpop.f32.mrb[8].mxu0  ;;  %v845_v5 = vld [vmem:[#allocation2] sm:$0xff] (!%p1097_p12) }
 0x13a   : > { %836 = vst [vmem:[#allocation2 + $0x10] sm:$0xff] %v829_v35  ;;  %v830_v38 = vadd.f32 %v809_v36, %v351_v34  ;;  %v1174_v39 = vpop.f32.mrb[8].mxu1  ;;  %v1135_v40 = vpop.f32.mrb[9].mxu0  ;;  %852 = vst [vmem:[%s1510_s2] sm:$0xff] (!%p1097_p12), %v845_v5  ;;  %v875_v8 = vmul.f32 (!%p1097_p12), %v845_v5, %v845_v5 }
 0x13b   : > { %v1136_v41 = vadd.f32 %v1135_v40, %v1134_v37  ;;  %v1175_v42 = vpop.f32.mrb[9].mxu1  ;;  %v1137_v43 = vpop.f32.mrb[10].mxu0  ;;  %v846_v6 = vld [vmem:[#allocation2 + $0x8] sm:$0xff] (!%p1097_p12)  ;;  %v859_v40 = vld [vmem:[%s1511_s3] sm:$0x1] (!%p1097_p12) }
 0x13c   : > { %837 = vst [vmem:[#allocation2 + $0x18] sm:$0xff] %v830_v38  ;;  %v1176_v44 = vadd.f32 %v1175_v42, %v1174_v39  ;;  %v1177_v45 = vpop.f32.mrb[10].mxu1  ;;  %v1138_v46 = vpop.f32.mrb[11].mxu0  ;;  %853 = vst [vmem:[%s1510_s2 + $0x8] sm:$0xff] (!%p1097_p12), %v846_v6  ;;  %v860_v9 = vadd.f32 (!%p1097_p12), %v846_v6, %v845_v5  ;;  %v876_v10 = vmul.f32 (!%p1097_p12), %v846_v6, %v846_v6 }
 0x13d   : > { %v1139_v48 = vadd.f32 %v1138_v46, %v1137_v43  ;;  %v1178_v49 = vpop.f32.mrb[11].mxu1  ;;  %v874_v43 = vld [vmem:[%s1512_s4] sm:$0x1] (!%p1097_p12) }
 0x13e   : > { %v814_v50 = vadd.f32 %v1176_v44, %v1136_v41  ;;  %v1179_v51 = vadd.f32 %v1178_v49, %v1177_v45  ;;  %v882_v16 = vadd.f32 (!%p1097_p12), %v876_v10, %v875_v8 }
 0x140   : > { %v831_v53 = vadd.f32 %v814_v50, %v352_v47  ;;  %v817_v54 = vadd.f32 %v1179_v51, %v1139_v48 }
 0x141   : > { %v1140_v55 = vpop.f32.mrb[12].mxu0  ;;  %v847_v7 = vld [vmem:[#allocation2 + $0x10] sm:$0xff] (!%p1097_p12) }
 0x142   : > { %838 = vst [vmem:[#allocation2 + $0x20] sm:$0xff] %v831_v53  ;;  %v832_v56 = vadd.f32 %v817_v54, %v353_v52  ;;  %v1180_v57 = vpop.f32.mrb[12].mxu1  ;;  %v1141_v58 = vpop.f32.mrb[13].mxu0  ;;  %854 = vst [vmem:[%s1510_s2 + $0x10] sm:$0xff] (!%p1097_p12), %v847_v7  ;;  %v877_v11 = vmul.f32 (!%p1097_p12), %v847_v7, %v847_v7  ;;  %v861_v17 = vadd.f32 (!%p1097_p12), %v860_v9, %v847_v7 }
 0x143   : > { %v1142_v59 = vadd.f32 %v1141_v58, %v1140_v55  ;;  %v1181_v60 = vpop.f32.mrb[13].mxu1  ;;  %v1143_v61 = vpop.f32.mrb[14].mxu0  ;;  %v848_v12 = vld [vmem:[#allocation2 + $0x18] sm:$0xff] (!%p1097_p12) }
 0x144   : > { %839 = vst [vmem:[#allocation2 + $0x28] sm:$0xff] %v832_v56  ;;  %v1182_v62 = vadd.f32 %v1181_v60, %v1180_v57  ;;  %v1183_v63 = vpop.f32.mrb[14].mxu1  ;;  %v1144_v0 = vpop.f32.mrb[15].mxu0  ;;  %844 = sbr.rel (%p1097_p12) target bundleno = 357 (0x165), region = 63  ;;  %855 = vst [vmem:[%s1510_s2 + $0x18] sm:$0xff] (!%p1097_p12), %v848_v12  ;;  %v878_v18 = vmul.f32 (!%p1097_p12), %v848_v12, %v848_v12  ;;  %v883_v19 = vadd.f32 (!%p1097_p12), %v882_v16, %v877_v11 }
 0x145   : > { %v1184_v2 = vpop.f32.mrb[15].mxu1  ;;  %v862_v20 = vadd.f32 (!%p1097_p12), %v861_v17, %v848_v12 }
 0x146   : > { %v822_v3 = vadd.f32 %v1182_v62, %v1142_v59  ;;  %v884_v22 = vadd.f32 (!%p1097_p12), %v883_v19, %v878_v18 }
 0x148   : > { %v833_v4 = vadd.f32 %v822_v3, %v354_v1 }
 0x149   : > { %v849_v13 = vld [vmem:[#allocation2 + $0x20] sm:$0xff] (!%p1097_p12) }
 0x14a   : > { %840 = vst [vmem:[#allocation2 + $0x30] sm:$0xff] %v833_v4  ;;  %856 = vst [vmem:[%s1510_s2 + $0x20] sm:$0xff] (!%p1097_p12), %v849_v13  ;;  %v879_v21 = vmul.f32 (!%p1097_p12), %v849_v13, %v849_v13  ;;  %v863_v23 = vadd.f32 (!%p1097_p12), %v862_v20, %v849_v13 }
 0x14b   : > { %v850_v14 = vld [vmem:[#allocation2 + $0x28] sm:$0xff] }
 0x14c   : > { %857 = vst [vmem:[%s1510_s2 + $0x28] sm:$0xff] %v850_v14  ;;  %v880_v24 = vmul.f32 %v850_v14, %v850_v14  ;;  %v885_v25 = vadd.f32 %v884_v22, %v879_v21  ;;  %v864_v26 = vadd.f32 %v863_v23, %v850_v14 }
 0x14e   : > { %v886_v28 = vadd.f32 %v885_v25, %v880_v24 }
 0x151   : > { %v851_v15 = vld [vmem:[#allocation2 + $0x30] sm:$0xff] }
 0x152   : > { %858 = vst [vmem:[%s1510_s2 + $0x30] sm:$0xff] %v851_v15  ;;  %v881_v27 = vmul.f32 %v851_v15, %v851_v15  ;;  %v865_v29 = vadd.f32 %v864_v26, %v851_v15 }
 0x154   : > { %v866_v30 = vrot.slane %v865_v29, 4  ;;  %v887_v31 = vadd.f32 %v886_v28, %v881_v27 }
 0x156   : > { %v867_v32 = vadd.f32 %v866_v30, %v865_v29  ;;  %v888_v33 = vrot.slane %v887_v31, 4 }
 0x158   : > { %v868_v34 = vrot.slane %v867_v32, 2  ;;  %v889_v35 = vadd.f32 %v888_v33, %v887_v31 }
 0x15a   : > { %v869_v36 = vadd.f32 %v868_v34, %v867_v32  ;;  %v890_v37 = vrot.slane %v889_v35, 2 }
 0x15c   : > { %v870_v38 = vrot.slane %v869_v36, 1  ;;  %v891_v39 = vadd.f32 %v890_v37, %v889_v35 }
 0x15e   : > { %v871_v41 = vadd.f32 %v870_v38, %v869_v36  ;;  %v892_v42 = vrot.slane %v891_v39, 1 }
 0x160   : > { %v872_v44 = vadd.f32 %v871_v41, %v859_v40  ;;  %v893_v45 = vadd.f32 %v892_v42, %v891_v39 }
 0x162   : > { %873 = vst [vmem:[%s1511_s3] sm:$0x1] %v872_v44  ;;  %v894_v46 = vadd.f32 %v893_v45, %v874_v43 }
 0x164   : > { %895 = vst [vmem:[%s1512_s4] sm:$0x1] %v894_v46 }
 0x165 PF: > { %s15_s19 = sadd.s32 1, %s1322_s19   ;;  %s1513_s15 = smov %s1310_s16 }
 0x166   : > { %p12_p13 = scmp.ge.s32.totalorder %s15_s19, 6   ;;  %s1514_s16 = smov %s1386_s23 }
 0x167   : > { %s1515_s17 = smov %s1318_s18  ;;  %s1516_s18 = smov %s1518_s20 }
 0x168   :  { %14 = sbr.rel (!%p12_p13) target bundleno = 3 (0x3), region = 125 }

// kernel: _lambda_.10
= control target key start
LH: loop header
LB: loop body
LE: loop exit
PB: predicated region body
PF: predicated region fallthrough
CT: control target
= control target key end

     0   :  { %s709_s15 = smov 0   ;;  %s711_s16 = smov 0   ;;  %s784_s0 = inlined_call_operand.vmem [shape: bf16[8,3200], index: 0, kind: input, shape index: {}]   ;;  %s785_s1 = inlined_call_operand.vmem [shape: bf16[3200,128], index: 1, kind: input, shape index: {}]   ;;  %s786_s2 = inlined_call_operand.vmem [shape: f32[8,128], index: 2, kind: output, shape index: {0}]   ;;  %s787_s3 = inlined_call_operand.vmem [shape: f32[1,128], index: 3, kind: output, shape index: {1}]   ;;  %s788_s4 = inlined_call_operand.vmem [shape: f32[1,128], index: 4, kind: output, shape index: {2}]  }
   0x1   :  { %s713_s17 = smov 0  }
   0x2 LB: > { %s27_s18 = sadd.s32 1, %s674_s16  ;;  %p570_p0 = scmp.ge.s32.totalorder %s678_s17, 1  ;;  %s678_s17 = sphi %s713_s17, %s15_s17   ;;  %s674_s16 = sphi %s711_s16, %s790_s16   ;;  %s670_s15 = sphi %s709_s15, %s789_s15  }
   0x3   : > { %p28_p1 = scmp.ge.s32.totalorder %s27_s18, 25  ;;  %p209_p2 = scmp.lt.s32.totalorder %s678_s17, 26 }
   0x5   : > { %s792_s18 = smov (%p28_p1, %s27_s18), 0  ;;  %p210_p3 = pnand %p570_p0, %p209_p2 }
   0x6   : > { %p256_p4 = scmp.lt.s32.totalorder (!%p210_p3), %s670_s15, 24  ;;  %s572_s19 = sshll.u32 (!%p210_p3), %s670_s15, 4 }
   0x7   : > { %213 = sbr.rel (%p210_p3) target bundleno = 303 (0x12f), region = 28  ;;  %p263_p5 = scmp.lt.s32.totalorder (!%p210_p3), %s572_s19, 399 }
   0x8   : > { %p286_p6 = scmp.eq.s32.totalorder (!%p210_p3), %s670_s15, 0 }
   0xe   : > { %s257_s20 = scalar_select %p256_p4, %s670_s15, 24 }
   0xf   : > { %s794_s19 = smov (!%p263_p5, %s572_s19), 399  ;;  %290 = sbr.rel (!%p286_p6) target bundleno = 22 (0x16), region = 32 }
  0x10   : > { %s571_s21 = sshll.u32 %s257_s20, 2  ;;  %s573_s25 = sshll.u32 %s794_s19, 2  ;;  %v680_v0 = vmov (%p286_p6), 0.0  }
  0x11   : > { %s736_s24 = scalar_lea.vmem %s784_s0, %s571_s21  ;;  %s741_s28 = scalar_lea.vmem %s785_s1, %s573_s25  ;;  %291 = vst [vmem:[%s787_s3] sm:$0x1] (%p286_p6), %v680_v0  ;;  %292 = vst [vmem:[%s788_s4] sm:$0x1] (%p286_p6), %v680_v0 }
  0x16 PF: > { %p575_p7 = scmp.ne.s32.totalorder %s670_s15, 0 }
  0x17   : > { %v681_v1 = vmov (!%p575_p7), 0.0  }
  0x18   : > { %295 = sbr.rel (%p575_p7) target bundleno = 31 (0x1f), region = 36  ;;  %296 = vst [vmem:[#allocation2] sm:$0xff] (!%p575_p7), %v681_v1 }
  0x1f PF: > { %v648_v2 = vld [vmem:[%s741_s28] sm:$0xff]   ;;  %v682_v3 = vmov 0.0   ;;  %v649_v4 = vld [vmem:[%s741_s28 + $0x8] sm:$0xff]   ;;  %vm683_vm0 = vmmov 0   ;;  %v650_v5 = vld [vmem:[%s741_s28 + $0x10] sm:$0xff]   ;;  %p584_p8 = scmp.ne.s32.totalorder %s670_s15, 24 }
  0x20   : > { %600 = vmatprep.subr.bf16.mxu0 %v682_v3  ;;  %616 = vmatprep.mubr.msk.bf16.mxu0 %vm683_vm0, %v682_v3  ;;  %v651_v6 = vld [vmem:[%s741_s28 + $0x18] sm:$0xff]   ;;  %v652_v7 = vld [vmem:[%s741_s28 + $0x20] sm:$0xff]   ;;  %v653_v8 = vld [vmem:[%s741_s28 + $0x28] sm:$0xff]  }
  0x21   : > { %601 = vmatpush3.bf16.msra.mxu0 %v648_v2  ;;  %v654_v9 = vld [vmem:[%s741_s28 + $0x30] sm:$0xff]   ;;  %v655_v10 = vld [vmem:[%s741_s28 + $0x38] sm:$0xff]   ;;  %v298_v11 = vld [vmem:[%s736_s24] sm:$0xf] }
  0x22   : > { %602 = vmatprep.subr.bf16.mxu0 %v682_v3  ;;  %v297_v12 = vld [vmem:[#allocation2] sm:$0xff] }
  0x23   : > { %v411_v29 = vld [vmem:[%s787_s3] sm:$0x1] (!%p584_p8) }
  0x24   : > { %v420_v32 = vld [vmem:[%s788_s4] sm:$0x1] (!%p584_p8) }
  0x25   : > { %603 = vmatpush3.bf16.msra.mxu0 %v649_v4 }
  0x26   : > { %604 = vmatprep.subr.bf16.mxu0 %v682_v3 }
  0x29   : > { %605 = vmatpush3.bf16.msra.mxu0 %v650_v5 }
  0x2a   : > { %606 = vmatprep.subr.bf16.mxu0 %v682_v3 }
  0x2d   : > { %607 = vmatpush3.bf16.msra.mxu0 %v651_v6 }
  0x2e   : > { %608 = vmatprep.subr.bf16.mxu0 %v682_v3 }
  0x31   : > { %609 = vmatpush3.bf16.msra.mxu0 %v652_v7 }
  0x32   : > { %610 = vmatprep.subr.bf16.mxu0 %v682_v3 }
  0x35   : > { %611 = vmatpush3.bf16.msra.mxu0 %v653_v8 }
  0x36   : > { %612 = vmatprep.subr.bf16.mxu0 %v682_v3 }
  0x39   : > { %613 = vmatpush3.bf16.msra.mxu0 %v654_v9 }
  0x3a   : > { %614 = vmatprep.subr.bf16.mxu0 %v682_v3 }
  0x3d   : > { %615 = vmatpush3.bf16.msra.mxu0 %v655_v10 }
  0x40   : > { %617 = vmatmul.mubr.bf16.vlgmr.msra.gmra.mrb[0].mxu0 %v298_v11 }
 0x110   : > { %408 = sbr.rel (%p584_p8) target bundleno = 303 (0x12f), region = 40 }
 0x113   : > { %v397_v13 = vpop.f32.mrb[0].mxu0 }
 0x114   : > { %v403_v14 = vadd.f32 %v397_v13, %v297_v12  ;;  %v618_v15 = vpop.f32.mrb[1].mxu0 }
 0x115   : > { %v400_v16 = vpop.f32.mrb[2].mxu0 }
 0x116   : > { %404 = vst [vmem:[#allocation2] sm:$0xff] %v403_v14  ;;  %v619_v17 = vpop.f32.mrb[3].mxu0 }
 0x11d   : > { %v409_v18 = vld [vmem:[#allocation2] sm:$0xff] }
 0x11e   : > { %410 = vst [vmem:[%s786_s2] sm:$0xff] %v409_v18  ;;  %v412_v19 = vrot.slane %v409_v18, 4  ;;  %v421_v20 = vmul.f32 %v409_v18, %v409_v18 }
 0x120   : > { %v413_v21 = vadd.f32 %v412_v19, %v409_v18  ;;  %v422_v22 = vrot.slane %v421_v20, 4 }
 0x122   : > { %v414_v23 = vrot.slane %v413_v21, 2  ;;  %v423_v24 = vadd.f32 %v422_v22, %v421_v20 }
 0x124   : > { %v415_v25 = vadd.f32 %v414_v23, %v413_v21  ;;  %v424_v26 = vrot.slane %v423_v24, 2 }
 0x126   : > { %v416_v27 = vrot.slane %v415_v25, 1  ;;  %v425_v28 = vadd.f32 %v424_v26, %v423_v24 }
 0x128   : > { %v417_v30 = vadd.f32 %v416_v27, %v415_v25  ;;  %v426_v31 = vrot.slane %v425_v28, 1 }
 0x12a   : > { %v418_v33 = vadd.f32 %v417_v30, %v411_v29  ;;  %v427_v34 = vadd.f32 %v426_v31, %v425_v28 }
 0x12c   : > { %419 = vst [vmem:[%s787_s3] sm:$0x1] %v418_v33  ;;  %v428_v35 = vadd.f32 %v427_v34, %v420_v32 }
 0x12e   : > { %429 = vst [vmem:[%s788_s4] sm:$0x1] %v428_v35 }
 0x12f PF: > { %s15_s17 = sadd.s32 1, %s678_s17   ;;  %s789_s15 = smov %s674_s16 }
 0x130   : > { %p12_p9 = scmp.ge.s32.totalorder %s15_s17, 27   ;;  %s790_s16 = smov %s792_s18 }
 0x132   :  { %14 = sbr.rel (!%p12_p9) target bundleno = 2 (0x2), region = 97 }

// kernel: _lambda_.11
= control target key start
LH: loop header
LB: loop body
LE: loop exit
PB: predicated region body
PF: predicated region fallthrough
CT: control target
= control target key end

     0   :  { %s71_s0 = inlined_call_operand.vmem [shape: f32[8,128], index: 0, kind: input, shape index: {}]   ;;  %s72_s1 = inlined_call_operand.vmem [shape: f32[1,128], index: 1, kind: input, shape index: {}]   ;;  %s73_s2 = inlined_call_operand.vmem [shape: f32[1,128], index: 2, kind: input, shape index: {}]   ;;  %s74_s3 = inlined_call_operand.vmem [shape: f32[8,128], index: 3, kind: output, shape index: {}]  }
   0x1   :  { %v14_v0 = vld [vmem:[%s71_s0] sm:$0xff] }
   0x2   :  { %v37_v1 = vld [vmem:[%s72_s1] ss:$0 sm:$0xff] }
   0x3   :  { %v38_v2 = vld [vmem:[%s73_s2] ss:$0 sm:$0xff]  ;;  %v22_v3 = vmul.f32 %v37_v1, %v14_v0 }
   0x5   :  { %v30_v4 = vadd.f32 %v38_v2, %v22_v3 }
   0x7   :  { %v31_v5 = vmax.f32 %v30_v4, 0.0 }
   0x9   :  { %32 = vst [vmem:[%s74_s3] sm:$0xff] %v31_v5 }

</bundles_post_ra>
